<compile_context>
chip_gen: v7x
topology: tpu7x:2x2x1
jax: 0.10.0
libtpu: 0.0.40
codegen_flags: <defaults>
</compile_context>

<pallas_src>
import functools

import jax
import jax.numpy as jnp
from jax import lax
from jax.experimental import pallas as pl
from jax.experimental.pallas import tpu as pltpu


def _round_up(a: int, m: int) -> int:
    return ((a + m - 1) // m) * m


def _linear_kernel(x_ref, w_ref, b_ref, o_ref, acc_ref):
    # x_ref: (tm, tk)   w_ref: (tn, tk)   b_ref: (1, tn)
    # o_ref: (tm, tn)   acc_ref: (tm, tn) f32 scratch
    k = pl.program_id(2)

    @pl.when(k == 0)
    def _():
        acc_ref[...] = jnp.zeros_like(acc_ref)

    # Contract x (tm, tk) with the *untransposed* weight tile (tn, tk) over
    # the shared K axis -- the MXU handles this natively, no transpose pass.
    acc_ref[...] += lax.dot_general(
        x_ref[...], w_ref[...],
        dimension_numbers=(((1,), (1,)), ((), ())),
        preferred_element_type=jnp.float32)

    @pl.when(k == pl.num_programs(2) - 1)
    def _():
        o_ref[...] = (acc_ref[...] + b_ref[...].astype(jnp.float32)).astype(o_ref.dtype)


def linear_classifier_forward(x, weight, bias, *, use_bf16=False,
                              tile_m=None, tile_n=None, tile_k=None):
    """Pallas forward of LinearClassifier.

    x:      (B, C, H, W) float32   (NCHW, like PyTorch)
    weight: (num_labels, dim) float32   (PyTorch nn.Linear layout, NOT transposed)
    bias:   (num_labels,) float32
    returns (B, num_labels) in x.dtype
    """
    B = x.shape[0]
    x2d = x.reshape(B, -1)                      # same as torch .view(B, -1)
    D = x2d.shape[1]
    N = weight.shape[0]
    assert weight.shape == (N, D)
    assert bias.shape == (N,)

    out_dtype = x2d.dtype
    compute_dtype = jnp.bfloat16 if use_bf16 else x2d.dtype
    sub = 16 if compute_dtype == jnp.bfloat16 else 8   # sublane packing minimum

    # ---- tile selection -------------------------------------------------
    if tile_m is None:
        tile_m = min(_round_up(B, sub), 256)
        tile_m = _round_up(tile_m, sub)
    if tile_n is None:
        tile_n = min(_round_up(N, 128), 512)           # lane-dense output tiles
    if tile_k is None:
        d128 = _round_up(D, 128)
        tile_k = d128 if d128 <= 4096 else 2048        # K-tile only for huge D

    B_pad = _round_up(B, tile_m)
    N_pad = _round_up(N, tile_n)
    D_pad = _round_up(D, tile_k)

    # ---- pad operands (zero K-padding is exact; padded rows/cols sliced off)
    x_p = jnp.pad(x2d.astype(compute_dtype), ((0, B_pad - B), (0, D_pad - D)))
    w_p = jnp.pad(weight.astype(compute_dtype), ((0, N_pad - N), (0, D_pad - D)))
    b_p = jnp.pad(bias.astype(jnp.float32), (0, N_pad - N)).reshape(1, N_pad)

    grid = (B_pad // tile_m, N_pad // tile_n, D_pad // tile_k)

    out = pl.pallas_call(
        _linear_kernel,
        out_shape=jax.ShapeDtypeStruct((B_pad, N_pad), out_dtype),
        grid_spec=pltpu.PrefetchScalarGridSpec(
            num_scalar_prefetch=0,
            grid=grid,
            in_specs=[
                pl.BlockSpec((tile_m, tile_k), lambda i, j, k: (i, k)),  # x tile
                pl.BlockSpec((tile_n, tile_k), lambda i, j, k: (j, k)),  # W tile (N, D) layout
                pl.BlockSpec((1, tile_n),      lambda i, j, k: (0, j)),  # bias tile
            ],
            out_specs=pl.BlockSpec((tile_m, tile_n), lambda i, j, k: (i, j)),
            scratch_shapes=[pltpu.VMEM((tile_m, tile_n), jnp.float32)],
        ),
        compiler_params=pltpu.CompilerParams(
            dimension_semantics=("parallel", "parallel", "arbitrary"),
        ),
    )(x_p, w_p, b_p)

    return out[:B, :N]


if __name__ == "__main__":
    key = jax.random.PRNGKey(0)
    kx, kw = jax.random.split(key)

    # Small shapes consistent with the module: NCHW features of a frozen net,
    # module-default 1000 labels (exercises the N-padding path: 1000 -> 1024).
    B, C, H, W = 2, 4, 16, 16
    dim = C * H * W            # 1024
    num_labels = 1000

    x = jax.random.normal(kx, (B, C, H, W), dtype=jnp.float32)

    # Deterministic parameter init matching the module's __init__:
    #   weight ~ N(0, 0.01), bias = 0
    weight = 0.01 * jax.random.normal(kw, (num_labels, dim), dtype=jnp.float32)
    bias = jnp.zeros((num_labels,), dtype=jnp.float32)

    # Reference in plain JAX (same math as torch nn.Linear).
    ref = x.reshape(B, -1) @ weight.T + bias

    # fp32 path: bit-for-bit comparable to the reference.
    y = linear_classifier_forward(x, weight, bias, use_bf16=False)
    y = jax.block_until_ready(y)
    assert y.shape == (B, num_labels)
    assert jnp.allclose(y, ref, atol=1e-4, rtol=1e-4)

    # bf16 weight/activation stream (fp32 accumulate) -- looser tolerance.
    y_bf16 = linear_classifier_forward(x, weight, bias, use_bf16=True)
    y_bf16 = jax.block_until_ready(y_bf16)
    assert y_bf16.shape == (B, num_labels)
    assert jnp.allclose(y_bf16, ref, atol=3e-2, rtol=3e-2)

    print("KERNEL_OK")
</pallas_src>

<mosaic_0001>
module attributes {stable_mosaic.version = 11 : i64} {
  func.func @_linear_kernel(%arg0: i32, %arg1: i32, %arg2: i32, %arg3: memref<8x1024xf32, #tpu.memory_space<vmem>>, %arg4: memref<512x1024xf32, #tpu.memory_space<vmem>>, %arg5: memref<1x512xf32, #tpu.memory_space<vmem>>, %arg6: memref<8x512xf32, #tpu.memory_space<vmem>>, %arg7: memref<8x512xf32, #tpu.memory_space<vmem>>) attributes {dimension_semantics = [#tpu.dimension_semantics<parallel>, #tpu.dimension_semantics<parallel>, #tpu.dimension_semantics<arbitrary>], iteration_bounds = array<i64: 1, 2, 1>, scalar_prefetch = 0 : i64, scratch_operands = 1 : i64, tpu.core_type = #tpu.core_type<tc>, window_params = [{transform_indices = @transform_0, window_bounds = array<i64: 8, 1024>}, {transform_indices = @transform_1, window_bounds = array<i64: 512, 1024>}, {transform_indices = @transform_2, window_bounds = array<i64: 1, 512>}, {transform_indices = @transform_3, window_bounds = array<i64: 8, 512>}]} {
    %c0_i32 = arith.constant 0 : i32
    %0 = arith.cmpi eq, %arg2, %c0_i32 : i32
    %1 = arith.extui %0 : i1 to i32
    %c0_i32_0 = arith.constant 0 : i32
    %2 = arith.cmpi ne, %1, %c0_i32_0 : i32
    scf.if %2 {
      %cst_10 = arith.constant 0.000000e+00 : f32
      %12 = vector.broadcast %cst_10 : f32 to vector<8x512xf32>
      %c0_11 = arith.constant 0 : index
      %c0_12 = arith.constant 0 : index
      %13 = vector.load %arg7[%c0_11, %c0_12] : memref<8x512xf32, #tpu.memory_space<vmem>>, vector<8x512xf32>
      tpu.vector_store %arg7[%c0_11, %c0_12], %12 {strides = array<i32>} : memref<8x512xf32, #tpu.memory_space<vmem>>, vector<8x512xf32>,
    } else {
    }
    %c0 = arith.constant 0 : index
    %c0_1 = arith.constant 0 : index
    %3 = vector.load %arg7[%c0, %c0_1] : memref<8x512xf32, #tpu.memory_space<vmem>>, vector<8x512xf32>
    %c0_2 = arith.constant 0 : index
    %c0_3 = arith.constant 0 : index
    %4 = vector.load %arg3[%c0_2, %c0_3] : memref<8x1024xf32, #tpu.memory_space<vmem>>, vector<8x1024xf32>
    %c0_4 = arith.constant 0 : index
    %c0_5 = arith.constant 0 : index
    %5 = vector.load %arg4[%c0_4, %c0_5] : memref<512x1024xf32, #tpu.memory_space<vmem>>, vector<512x1024xf32>
    %cst = arith.constant dense<0.000000e+00> : vector<8x512xf32>
    %6 = tpu.matmul %4, %5, %cst {dimension_numbers = #tpu.dot_dimension_numbers<[1], [1], [0], [0], [0, 0, 1, 0], [], []>} : vector<8x1024xf32>, vector<512x1024xf32>, vector<8x512xf32> -> vector<8x512xf32>
    %7 = arith.addf %3, %6 : vector<8x512xf32>
    %c0_6 = arith.constant 0 : index
    %c0_7 = arith.constant 0 : index
    %8 = vector.load %arg7[%c0_6, %c0_7] : memref<8x512xf32, #tpu.memory_space<vmem>>, vector<8x512xf32>
    tpu.vector_store %arg7[%c0_6, %c0_7], %7 {strides = array<i32>} : memref<8x512xf32, #tpu.memory_space<vmem>>, vector<8x512xf32>,
    %c0_i32_8 = arith.constant 0 : i32
    %9 = arith.cmpi eq, %arg2, %c0_i32_8 : i32
    %10 = arith.extui %9 : i1 to i32
    %c0_i32_9 = arith.constant 0 : i32
    %11 = arith.cmpi ne, %10, %c0_i32_9 : i32
    scf.if %11 {
      %c0_10 = arith.constant 0 : index
      %c0_11 = arith.constant 0 : index
      %12 = vector.load %arg7[%c0_10, %c0_11] : memref<8x512xf32, #tpu.memory_space<vmem>>, vector<8x512xf32>
      %c0_12 = arith.constant 0 : index
      %c0_13 = arith.constant 0 : index
      %13 = vector.load %arg5[%c0_12, %c0_13] : memref<1x512xf32, #tpu.memory_space<vmem>>, vector<1x512xf32>
      %14 = vector.broadcast %13 : vector<1x512xf32> to vector<8x512xf32>
      %15 = arith.addf %12, %14 : vector<8x512xf32>
      %c0_14 = arith.constant 0 : index
      %c0_15 = arith.constant 0 : index
      %16 = vector.load %arg6[%c0_14, %c0_15] : memref<8x512xf32, #tpu.memory_space<vmem>>, vector<8x512xf32>
      tpu.vector_store %arg6[%c0_14, %c0_15], %15 {strides = array<i32>} : memref<8x512xf32, #tpu.memory_space<vmem>>, vector<8x512xf32>,
    } else {
    }
    return
  }
  func.func @transform_0(%arg0: i32, %arg1: i32, %arg2: i32) -> (i32, i32) {
    %c0_i32 = arith.constant 0 : i32
    return %arg0, %arg2 : i32, i32
  }
  func.func @transform_1(%arg0: i32, %arg1: i32, %arg2: i32) -> (i32, i32) {
    %c0_i32 = arith.constant 0 : i32
    return %arg1, %arg2 : i32, i32
  }
  func.func @transform_2(%arg0: i32, %arg1: i32, %arg2: i32) -> (i32, i32) {
    %c0_i32 = arith.constant 0 : i32
    %c0_i32_0 = arith.constant 0 : i32
    return %c0_i32, %arg1 : i32, i32
  }
  func.func @transform_3(%arg0: i32, %arg1: i32, %arg2: i32) -> (i32, i32) {
    %c0_i32 = arith.constant 0 : i32
    return %arg0, %arg1 : i32, i32
  }
}

</mosaic_0001>

<bundles_post_ra>
// kernel: tpu_custom_call.1
= control target key start
LH: loop header
LB: loop body
LE: loop exit
PB: predicated region body
PF: predicated region fallthrough
CT: control target
= control target key end

     0   :  { %s3162_s0 = inlined_call_operand.hbm [shape: f32[8,1024], index: 0, kind: input, shape index: {}]   ;;  %s3163_s1 = inlined_call_operand.hbm [shape: f32[1024,1024], index: 1, kind: input, shape index: {}]   ;;  %s3164_s2 = inlined_call_operand.hbm [shape: f32[1,1024], index: 2, kind: input, shape index: {}]   ;;  %s3165_s3 = inlined_call_operand.hbm [shape: f32[8,1024], index: 3, kind: output, shape index: {}]  }
   0x1   :  { %3174 = sst [smem:[#allocation14_spill]] %s3163_s1 }
   0x2   :  { %8 = vsyncpa [#allocation4], 0 }
   0x3   :  { %9 = vsyncpa [#allocation7], 0 }
   0x4   :  { %11 = vsyncpa [#allocation7 + $0x1], 0 }
   0x5   :  { %12 = vsyncpa [#allocation5], 0 }
   0x6   :  { %14 = vsyncpa [#allocation5 + $0x1], 0  ;;  %s2398_s12 = smov 0   ;;  %s2400_s13 = smov 0  }
   0x7   :  { %s2402_s14 = smov 0   ;;  %s2404_s15 = smov 0  }
   0x8   :  { %s2406_s16 = smov 0   ;;  %s2408_s17 = smov 0  }
   0x9 LB: > { %s35_s18 = sadd.s32 1, %s2366_s16  ;;  %s76_s19 = sadd.s32 1, %s2358_s14  ;;  %s2370_s17 = sphi %s2408_s17, %s20_s17   ;;  %s2366_s16 = sphi %s2406_s16, %s3198_s16   ;;  %s2362_s15 = sphi %s2404_s15, %s3197_s15   ;;  %s2358_s14 = sphi %s2402_s14, %s3196_s14   ;;  %s2354_s13 = sphi %s2400_s13, %s3195_s13   ;;  %s2350_s12 = sphi %s2398_s12, %s3194_s12  }
   0xa   : > { %p37_p0 = scmp.ge.s32.totalorder %s35_s18, 2  ;;  %p83_p1 = scmp.ne.s32.totalorder %s2358_s14, %s2354_s13 }
   0xb   : > { %p84_p2 = scmp.eq.s32.totalorder %s2370_s17, 0  ;;  %p2142_p5 = scmp.lt.s32.totalorder %s2370_s17, 2 }
   0xc   : > { %s3200_s18 = smov (%p37_p0, %s35_s18), 0  ;;  %s183_s21 = sand.u32 1, %s2370_s17  }
   0xd   : > { %3175 = sst [smem:[#allocation13_spill]] %s3200_s18  ;;  %p85_p4 = por %p84_p2, %p83_p1 }
   0xe   : > { %s71_s20 = ssub.s32 %s2366_s16, %s3200_s18  ;;  %s185_s22 = sand.u32 1, %s2358_s14  }
   0xf   : > { %p74_p6 = scmp.eq.s32.totalorder %s71_s20, 0  ;;  %s1589_s23 = sshll.u32 %s2366_s16, 16 }
  0x10   : > { %s1571_s25 = sshll.u32 %s185_s22, 12  ;;  %s3176_s1 = sld [smem:[#allocation14_spill]] }
  0x11   : > { %s2446_s24 = scalar_select %p74_p6, %s2358_s14, %s76_s19  }
  0x12   : > { %p2455_p7 = pnand %p2142_p5, %p85_p4  ;;  %s187_s30 = scalar_lea.vmem [#allocation6], %s1571_s25 }
  0x13   : > { %s197_s4 = sshll.u32 %s187_s30, 4  ;;  %s2461_s5 = scalar_lea.sflag [#allocation7], %s183_s21  ;;  %s2459_s4 = int_to_ptr.vmem [resolvable:$true] %s197_s4 }
  0x14   : > { %s3177_s29 = scalar_select %p2455_p7, 1, 0 }
  0x15   : > { %p3168_p9 = pneg %p2455_p7 }
  0x16   : > { %s2453_s28 = scalar_lea.hbm %s3176_s1, %s1589_s23  ;;  %s2201_s9 = scalar_lea.hbm %s3176_s1, 131072 }
  0x17   : > { %s2196_s6 = scalar_lea.hbm %s2453_s28, 65536  ;;  %p2202_p12 = scmp.lt.u32.totalorder %s2453_s28, %s3176_s1 }
  0x18   : > { %p2197_p8 = scmp.ne.s32.totalorder %s2453_s28, %s2196_s6  ;;  %p2203_p13 = scmp.lt.u32.totalorder %s2201_s9, %s2196_s6 }
  0x19   : > { %p2205_p2 = scmp.lt.u32.totalorder %s2196_s6, %s2453_s28 }
  0x1a   : > { %p2199_p10 = pnand %p3168_p9, %p2197_p8  ;;  %p2204_p0 = por %p2203_p13, %p2202_p12 }
  0x1c   : > { %p2200_p11 = pneg %p2199_p10  ;;  %p2206_p4 = por %p2205_p2, %p2204_p0 }
  0x1e   : > { %p2207_p5 = pnand %p2206_p4, %p2200_p11 }
  0x20   : > { %2210 = shalt.err (!%p2207_p5)
}
  0x21   : > { %s2211_s19 = scalar_lea.vmem %s2459_s4, 65536  ;;  %s2372_s20 = smov [#allocation6]  }
  0x22   : > { %p2212_p6 = scmp.ne.s32.totalorder %s2459_s4, %s2211_s19  ;;  %s2216_s21 = sshll.u32 %s2372_s20, 4  ;;  %s2217_s21 = int_to_ptr.vmem [resolvable:$false] %s2216_s21 }
  0x23   : > { %s2218_s23 = scalar_lea.vmem %s2217_s21, 131072  ;;  %p2219_p3 = scmp.lt.s32.totalorder %s2459_s4, %s2217_s21 }
  0x24   : > { %p2214_p8 = pnand %p2212_p6, %p3168_p9  ;;  %p2220_p12 = scmp.lt.s32.totalorder %s2218_s23, %s2211_s19 }
  0x26   : > { %p2215_p10 = pneg %p2214_p8  ;;  %p2221_p13 = por %p2220_p12, %p2219_p3 }
  0x28   : > { %p2222_p0 = pnand %p2221_p13, %p2215_p10 }
  0x2a   : > { %2225 = shalt.err (!%p2222_p0)
}
  0x2b   : > { %s2373_s25 = smov 1024   ;;  %s2374_s26 = smov 64  }
  0x2c   : > { %2133 = dma.hbm_to_vmem [thread:$0]  (!%p2455_p7), %s2453_s28, 65536, %s2459_s4, %s2461_s5, %s2373_s25, %s2373_s25, %s2374_s26  }
  0x2d   : > { %s2490_s27 = sadd.s32 4294967295, %s2370_s17   ;;  %s1567_s30 = sadd.s32 4294967294, %s2370_s17  }
  0x2e   : > { %p89_p3 = scmp.ne.s32.totalorder %s2354_s13, %s2350_s12  ;;  %p3167_p11 = scmp.eq.s32.totalorder %s2490_s27, 0 }
  0x2f   : > { %p141_p2 = scmp.eq.s32.totalorder %s2490_s27, 1  ;;  %p147_p4 = scmp.eq.s32.totalorder %s1567_s30, 1 }
  0x30   : > { %p1568_p5 = scmp.ge.s32.totalorder %s2370_s17, 1  ;;  %p2500_p6 = por %p3167_p11, %p89_p3 }
  0x31   : > { %p2507_p8 = por %p141_p2, %p83_p1  ;;  %p2511_p10 = por %p147_p4, %p89_p3 }
  0x32   : > { %s3178_s6 = scalar_select %p2500_p6, 1, 0 }
  0x33   : > { %s3179_s28 = scalar_select %p2507_p8, 1, 0 }
  0x34   : > { %s3180_s4 = scalar_select %p2511_p10, 1, 0 }
  0x35   : > { %p154_p12 = scmp.lt.s32.totalorder %s2370_s17, 3  ;;  %s2375_s8 = smov [#allocation3]  }
  0x36   : > { %s172_s9 = sshll.u32 %s2375_s8, 4  ;;  %s1575_s10 = sshll.u32 %s185_s22, 2  ;;  %s173_s9 = int_to_ptr.vmem [resolvable:$true] %s172_s9 }
  0x37   : > { %p2516_p13 = pnand %p1568_p5, %p154_p12  ;;  %s1590_s11 = sshll.u32 %s2366_s16, 6 }
  0x38   : > { %s211_s19 = scalar_lea.vmem [#allocation8], %s1575_s10  ;;  %s2534_s26 = scalar_lea.hbm %s3164_s2, %s1590_s11 }
  0x39   : > { %s3181_s7 = scalar_select %p2516_p13, 1, 0 }
  0x3a   : > { %p2126_p0 = pneg %p2516_p13  ;;  %s219_s20 = sshll.u32 %s211_s19, 4  ;;  %s2536_s20 = int_to_ptr.vmem [resolvable:$true] %s219_s20 }
  0x3b   : > { %s2226_s8 = scalar_lea.hbm %s3162_s0, 1024 }
  0x3c   : > { %p2527_p1 = pnand %p2126_p0, %p3167_p11  ;;  %p2227_p3 = scmp.ne.s32.totalorder %s3162_s0, %s2226_s8 }
  0x3d   : > { %p2233_p12 = scmp.lt.u32.totalorder %s2226_s8, %s3162_s0 }
  0x3e   : > { %p2228_p2 = pneg %p2527_p1 }
  0x40   : > { %p2229_p4 = pnand %p2228_p2, %p2227_p3 }
  0x42   : > { %p2230_p5 = pneg %p2229_p4 }
  0x44   : > { %p2235_p0 = pnand %p2233_p12, %p2230_p5 }
  0x46   : > { %2238 = shalt.err (!%p2235_p0)
}
  0x47   : > { %s2239_s11 = scalar_lea.vmem %s173_s9, 1024  ;;  %p2247_p8 = scmp.lt.s32.totalorder %s173_s9, %s173_s9 }
  0x48   : > { %p2240_p11 = scmp.ne.s32.totalorder %s173_s9, %s2239_s11  ;;  %p2248_p6 = scmp.lt.s32.totalorder %s2239_s11, %s2239_s11 }
  0x4a   : > { %p2242_p9 = pnand %p2240_p11, %p2228_p2  ;;  %p2249_p13 = por %p2248_p6, %p2247_p8 }
  0x4c   : > { %p2243_p10 = pneg %p2242_p9 }
  0x4e   : > { %p2250_p7 = pnand %p2249_p13, %p2243_p10 }
  0x50   : > { %2253 = shalt.err (!%p2250_p7)
}
  0x51   : > { %2129 = dma.hbm_to_vmem [thread:$0]  (!%p2527_p1), %s3162_s0, 1024, %s173_s9, [#allocation4]  }
  0x52   : > { %s2254_s1 = scalar_lea.hbm %s2534_s26, 64  ;;  %p3183_p11 = scmp.ne.s32.totalorder %s3177_s29, 0 }
  0x53   : > { %p2255_p3 = scmp.ne.s32.totalorder %s2534_s26, %s2254_s1  ;;  %s2259_s30 = scalar_lea.hbm %s3164_s2, 128 }
  0x54   : > { %p3184_p9 = pneg %p3183_p11  ;;  %p2260_p7 = scmp.lt.u32.totalorder %s2534_s26, %s3164_s2 }
  0x55   : > { %p2261_p6 = scmp.lt.u32.totalorder %s2259_s30, %s2254_s1  ;;  %p2263_p10 = scmp.lt.u32.totalorder %s2254_s1, %s2534_s26 }
  0x56   : > { %p2257_p2 = pnand %p2255_p3, %p3184_p9 }
  0x57   : > { %p2262_p8 = por %p2261_p6, %p2260_p7 }
  0x58   : > { %p2258_p4 = pneg %p2257_p2 }
  0x59   : > { %p2264_p13 = por %p2263_p10, %p2262_p8 }
  0x5b   : > { %p2265_p5 = pnand %p2264_p13, %p2258_p4 }
  0x5d   : > { %2268 = shalt.err (!%p2265_p5)
}
  0x5e   : > { %s2269_s9 = scalar_lea.vmem %s2536_s20, 64  ;;  %p3185_p12 = pmov %p3184_p9 }
  0x5f   : > { %p2270_p1 = scmp.ne.s32.totalorder %s2536_s20, %s2269_s9  ;;  %s2376_s10 = smov [#allocation8]  }
  0x60   : > { %s2274_s19 = sshll.u32 %s2376_s10, 4  ;;  %s2275_s19 = int_to_ptr.vmem [resolvable:$false] %s2274_s19 }
  0x61   : > { %p2272_p0 = pnand %p2270_p1, %p3185_p12  ;;  %s2276_s11 = scalar_lea.vmem %s2275_s19, 128 }
  0x62   : > { %p2277_p9 = scmp.lt.s32.totalorder %s2536_s20, %s2275_s19  ;;  %p2278_p2 = scmp.lt.s32.totalorder %s2276_s11, %s2269_s9 }
  0x63   : > { %p2273_p3 = pneg %p2272_p0 }
  0x64   : > { %p2279_p7 = por %p2278_p2, %p2277_p9 }
  0x66   : > { %p2280_p6 = pnand %p2279_p7, %p2273_p3 }
  0x68   : > { %2283 = shalt.err (!%p2280_p6)
}
  0x69   : > { %2136 = dma.hbm_to_vmem [thread:$0]  (!%p3183_p11), %s2534_s26, 64, %s2536_s20, %s2461_s5  }
  0x6a   : > { %p3186_p4 = scmp.ne.s32.totalorder %s3181_s7, 0 }
  0x6b   : > { %p3187_p8 = scmp.eq.s32.totalorder (!%p3186_p4), %s2490_s27, 0 }
  0x6c   : > { %228 = sbr.rel (%p3186_p4) target bundleno = 868 (0x364), region = 32 }
  0x73   : > { %2337 = dma.done.wait (%p3187_p8), [#allocation4], 1024   ;;  %p3188_p10 = pmov %p3187_p8 }
  0x74   : > { %s234_s23 = sand.u32 1, %s2490_s27   ;;  %s2586_s25 = sand.u32 1, %s2354_s13  }
  0x75   : > { %2339 = vsyncadd (%p3188_p10), [#allocation4], 4294966272  ;;  %s1580_s29 = sshll.u32 %s2586_s25, 12  ;;  %s235_s1 = scalar_lea.sflag [#allocation7], %s234_s23 }
  0x76   : > { %s2589_s18 = scalar_lea.vmem [#allocation6], %s1580_s29  ;;  %p3189_p11 = scmp.ne.s32.totalorder %s3178_s6, 0 }
  0x78   : > { %2341 = dma.done.wait (%p3189_p11), %s235_s1, 65600  }
  0x79   : > { %2343 = vsyncadd (%p3189_p11), %s235_s1, 4294901696  ;;  %v301_v0 = vld [vmem:[%s2589_s18 + $0x8] sm:$0xff]  ;;  %v300_v5 = vld [vmem:[%s2589_s18] sm:$0xff]  ;;  %s1581_s5 = sshll.u32 %s2586_s25, 2  ;;  %s1582_s27 = sshll.u32 %s2586_s25, 5 }
  0x7a   : > { %v309_v1 = vld [vmem:[%s2589_s18 + $0x48] sm:$0xff]  ;;  %v308_v6 = vld [vmem:[%s2589_s18 + $0x40] sm:$0xff]  ;;  %s247_s6 = scalar_lea.vmem [#allocation8], %s1581_s5  ;;  %s1591_s7 = sshll.u32 %s2362_s15, 9 }
  0x7b   : > { %v557_v2 = vld [vmem:[%s2589_s18 + $0x808] sm:$0xff]  ;;  %v1592_v3 = vpack.c.bf16 %v309_v1, %v301_v0  ;;  %v1594_v8 = vpack.c.bf16 %v308_v6, %v300_v5  ;;  %v556_v9 = vld [vmem:[%s2589_s18 + $0x800] sm:$0xff]  ;;  %s274_s20 = scalar_lea.vmem [#allocation9], %s1582_s27  ;;  %s3113_s21 = scalar_lea.hbm %s3165_s3, %s1591_s7 }
  0x7c   : > { %v565_v4 = vld [vmem:[%s2589_s18 + $0x848] sm:$0xff]  ;;  %v564_v10 = vld [vmem:[%s2589_s18 + $0x840] sm:$0xff]  ;;  %s1442_s26 = sshll.u32 %s274_s20, 4  ;;  %s1426_s15 = scalar_lea.sflag [#allocation5], %s2586_s25  ;;  %s3115_s26 = int_to_ptr.vmem [resolvable:$true] %s1442_s26 }
  0x7d   : > { %v1848_v7 = vpack.c.bf16 %v565_v4, %v557_v2  ;;  %v317_v11 = vld [vmem:[%s2589_s18 + $0x88] sm:$0xff]  ;;  %1593 = vmatprep.subr.bf16.mxu0 %v1592_v3  ;;  %v1850_v12 = vpack.c.bf16 %v564_v10, %v556_v9  ;;  %v316_v18 = vld [vmem:[%s2589_s18 + $0x80] sm:$0xff]  ;;  %s2284_s8 = scalar_lea.vmem %s3115_s26, 512  ;;  %p3190_p5 = scmp.ne.s32.totalorder %s3179_s28, 0 }
  0x7e   : > { %v325_v13 = vld [vmem:[%s2589_s18 + $0xc8] sm:$0xff]  ;;  %1595 = vmatpush1.bf16.xpose.msra.mxu0 %v1594_v8  ;;  %v324_v19 = vld [vmem:[%s2589_s18 + $0xc0] sm:$0xff]  ;;  %p2285_p13 = scmp.ne.s32.totalorder %s3115_s26, %s2284_s8  ;;  %s2377_s9 = smov [#allocation9]  }
  0x7f   : > { %v573_v14 = vld [vmem:[%s2589_s18 + $0x888] sm:$0xff]  ;;  %1849 = vmatprep.subr.bf16.mxu1 %v1848_v7  ;;  %v1596_v16 = vpack.c.bf16 %v325_v13, %v317_v11  ;;  %v572_v20 = vld [vmem:[%s2589_s18 + $0x880] sm:$0xff]  ;;  %v1598_v26 = vpack.c.bf16 %v324_v19, %v316_v18  ;;  %s2288_s10 = sshll.u32 %s2377_s9, 4  ;;  %s2289_s10 = int_to_ptr.vmem [resolvable:$false] %s2288_s10 }
  0x80   : > { %v581_v15 = vld [vmem:[%s2589_s18 + $0x8c8] sm:$0xff]  ;;  %1851 = vmatpush1.bf16.xpose.msra.mxu1 %v1850_v12  ;;  %v580_v21 = vld [vmem:[%s2589_s18 + $0x8c0] sm:$0xff]  ;;  %p2286_p1 = pnand %p2285_p13, %p3190_p5  ;;  %s2290_s19 = scalar_lea.vmem %s2289_s10, 1024 }
  0x81   : > { %v1852_v17 = vpack.c.bf16 %v581_v15, %v573_v14  ;;  %1597 = vmatprep.subr.bf16.mxu0 %v1596_v16  ;;  %v333_v22 = vld [vmem:[%s2589_s18 + $0x108] sm:$0xff]  ;;  %v1854_v27 = vpack.c.bf16 %v580_v21, %v572_v20  ;;  %v332_v30 = vld [vmem:[%s2589_s18 + $0x100] sm:$0xff]  ;;  %p2291_p0 = scmp.lt.s32.totalorder %s3115_s26, %s2289_s10  ;;  %p2292_p3 = scmp.lt.s32.totalorder %s2290_s19, %s2284_s8 }
  0x82   : > { %v341_v23 = vld [vmem:[%s2589_s18 + $0x148] sm:$0xff]  ;;  %v340_v31 = vld [vmem:[%s2589_s18 + $0x140] sm:$0xff]  ;;  %p2287_p12 = pneg %p2286_p1 }
  0x83   : > { %1853 = vmatprep.subr.bf16.mxu1 %v1852_v17  ;;  %v589_v24 = vld [vmem:[%s2589_s18 + $0x908] sm:$0xff]  ;;  %v1600_v28 = vpack.c.bf16 %v341_v23, %v333_v22  ;;  %v588_v32 = vld [vmem:[%s2589_s18 + $0x900] sm:$0xff]  ;;  %v1602_v38 = vpack.c.bf16 %v340_v31, %v332_v30  ;;  %p2293_p9 = por %p2292_p3, %p2291_p0 }
  0x84   : > { %v597_v25 = vld [vmem:[%s2589_s18 + $0x948] sm:$0xff]  ;;  %v596_v33 = vld [vmem:[%s2589_s18 + $0x940] sm:$0xff] }
  0x85   : > { %v1856_v29 = vpack.c.bf16 %v597_v25, %v589_v24  ;;  %v349_v34 = vld [vmem:[%s2589_s18 + $0x188] sm:$0xff]  ;;  %v1858_v39 = vpack.c.bf16 %v596_v33, %v588_v32  ;;  %v348_v42 = vld [vmem:[%s2589_s18 + $0x180] sm:$0xff]  ;;  %p2294_p2 = pnand %p2293_p9, %p2287_p12 }
  0x86   : > { %1599 = vmatpush1.bf16.xpose.msra.mxu0 %v1598_v26  ;;  %v357_v35 = vld [vmem:[%s2589_s18 + $0x1c8] sm:$0xff]  ;;  %v356_v43 = vld [vmem:[%s2589_s18 + $0x1c0] sm:$0xff] }
  0x87   : > { %1601 = vmatprep.subr.bf16.mxu0 %v1600_v28  ;;  %v605_v36 = vld [vmem:[%s2589_s18 + $0x988] sm:$0xff]  ;;  %v1604_v40 = vpack.c.bf16 %v357_v35, %v349_v34  ;;  %v604_v44 = vld [vmem:[%s2589_s18 + $0x980] sm:$0xff]  ;;  %v1606_v50 = vpack.c.bf16 %v356_v43, %v348_v42 }
  0x88   : > { %1855 = vmatpush1.bf16.xpose.msra.mxu1 %v1854_v27  ;;  %v613_v37 = vld [vmem:[%s2589_s18 + $0x9c8] sm:$0xff]  ;;  %v612_v45 = vld [vmem:[%s2589_s18 + $0x9c0] sm:$0xff] }
  0x89   : > { %1857 = vmatprep.subr.bf16.mxu1 %v1856_v29  ;;  %v1860_v41 = vpack.c.bf16 %v613_v37, %v605_v36  ;;  %v365_v46 = vld [vmem:[%s2589_s18 + $0x208] sm:$0xff]  ;;  %v1862_v51 = vpack.c.bf16 %v612_v45, %v604_v44  ;;  %v364_v54 = vld [vmem:[%s2589_s18 + $0x200] sm:$0xff] }
  0x8a   : > { %v373_v47 = vld [vmem:[%s2589_s18 + $0x248] sm:$0xff]  ;;  %v372_v55 = vld [vmem:[%s2589_s18 + $0x240] sm:$0xff] }
  0x8b   : > { %v621_v48 = vld [vmem:[%s2589_s18 + $0xa08] sm:$0xff]  ;;  %v1608_v52 = vpack.c.bf16 %v373_v47, %v365_v46  ;;  %v620_v56 = vld [vmem:[%s2589_s18 + $0xa00] sm:$0xff]  ;;  %v1610_v62 = vpack.c.bf16 %v372_v55, %v364_v54 }
  0x8c   : > { %v629_v49 = vld [vmem:[%s2589_s18 + $0xa48] sm:$0xff]  ;;  %v628_v57 = vld [vmem:[%s2589_s18 + $0xa40] sm:$0xff] }
  0x8d   : > { %v1864_v53 = vpack.c.bf16 %v629_v49, %v621_v48  ;;  %v381_v58 = vld [vmem:[%s2589_s18 + $0x288] sm:$0xff]  ;;  %v1866_v63 = vpack.c.bf16 %v628_v57, %v620_v56  ;;  %v380_v2 = vld [vmem:[%s2589_s18 + $0x280] sm:$0xff] }
  0x8e   : > { %1603 = vmatpush1.bf16.xpose.msra.mxu0 %v1602_v38  ;;  %v389_v59 = vld [vmem:[%s2589_s18 + $0x2c8] sm:$0xff]  ;;  %v388_v3 = vld [vmem:[%s2589_s18 + $0x2c0] sm:$0xff] }
  0x8f   : > { %1605 = vmatprep.subr.bf16.mxu0 %v1604_v40  ;;  %v637_v60 = vld [vmem:[%s2589_s18 + $0xa88] sm:$0xff]  ;;  %v1612_v0 = vpack.c.bf16 %v389_v59, %v381_v58  ;;  %v636_v4 = vld [vmem:[%s2589_s18 + $0xa80] sm:$0xff]  ;;  %v1614_v10 = vpack.c.bf16 %v388_v3, %v380_v2 }
  0x90   : > { %1859 = vmatpush1.bf16.xpose.msra.mxu1 %v1858_v39  ;;  %v645_v61 = vld [vmem:[%s2589_s18 + $0xac8] sm:$0xff]  ;;  %v644_v5 = vld [vmem:[%s2589_s18 + $0xac0] sm:$0xff] }
  0x91   : > { %1861 = vmatprep.subr.bf16.mxu1 %v1860_v41  ;;  %v1868_v1 = vpack.c.bf16 %v645_v61, %v637_v60  ;;  %v397_v6 = vld [vmem:[%s2589_s18 + $0x308] sm:$0xff]  ;;  %v1870_v11 = vpack.c.bf16 %v644_v5, %v636_v4  ;;  %v396_v15 = vld [vmem:[%s2589_s18 + $0x300] sm:$0xff] }
  0x92   : > { %v405_v7 = vld [vmem:[%s2589_s18 + $0x348] sm:$0xff]  ;;  %v404_v16 = vld [vmem:[%s2589_s18 + $0x340] sm:$0xff] }
  0x93   : > { %v653_v8 = vld [vmem:[%s2589_s18 + $0xb08] sm:$0xff]  ;;  %v1616_v12 = vpack.c.bf16 %v405_v7, %v397_v6  ;;  %v652_v17 = vld [vmem:[%s2589_s18 + $0xb00] sm:$0xff]  ;;  %v1618_v23 = vpack.c.bf16 %v404_v16, %v396_v15 }
  0x94   : > { %v661_v9 = vld [vmem:[%s2589_s18 + $0xb48] sm:$0xff]  ;;  %v660_v18 = vld [vmem:[%s2589_s18 + $0xb40] sm:$0xff] }
  0x95   : > { %v1872_v13 = vpack.c.bf16 %v661_v9, %v653_v8  ;;  %v293_v14 = vld [vmem:[#allocation3 + $0x8] sm:$0xff]  ;;  %v1874_v24 = vpack.c.bf16 %v660_v18, %v652_v17  ;;  %v412_v27 = vld [vmem:[%s2589_s18 + $0x380] sm:$0xff] }
  0x96   : > { %1607 = vmatpush1.bf16.xpose.msra.mxu0 %v1606_v50  ;;  %876 = vmatprep.mubr.f32.mxu0 %v293_v14  ;;  %v413_v19 = vld [vmem:[%s2589_s18 + $0x388] sm:$0xff]  ;;  %v420_v28 = vld [vmem:[%s2589_s18 + $0x3c0] sm:$0xff] }
  0x97   : > { %1609 = vmatprep.subr.bf16.mxu0 %v1608_v52  ;;  %1160 = vmatprep.mubr.f32.mxu1 %v293_v14  ;;  %v421_v20 = vld [vmem:[%s2589_s18 + $0x3c8] sm:$0xff]  ;;  %v668_v29 = vld [vmem:[%s2589_s18 + $0xb80] sm:$0xff]  ;;  %v1622_v35 = vpack.c.bf16 %v420_v28, %v412_v27 }
  0x98   : > { %1863 = vmatpush1.bf16.xpose.msra.mxu1 %v1862_v51  ;;  %v669_v21 = vld [vmem:[%s2589_s18 + $0xb88] sm:$0xff]  ;;  %v1620_v25 = vpack.c.bf16 %v421_v20, %v413_v19  ;;  %v676_v30 = vld [vmem:[%s2589_s18 + $0xbc0] sm:$0xff] }
  0x99   : > { %1865 = vmatprep.subr.bf16.mxu1 %v1864_v53  ;;  %v677_v22 = vld [vmem:[%s2589_s18 + $0xbc8] sm:$0xff]  ;;  %v1878_v36 = vpack.c.bf16 %v676_v30, %v668_v29  ;;  %v428_v39 = vld [vmem:[%s2589_s18 + $0x400] sm:$0xff] }
  0x9a   : > { %v1876_v26 = vpack.c.bf16 %v677_v22, %v669_v21  ;;  %v429_v31 = vld [vmem:[%s2589_s18 + $0x408] sm:$0xff]  ;;  %v436_v40 = vld [vmem:[%s2589_s18 + $0x440] sm:$0xff] }
  0x9b   : > { %v437_v32 = vld [vmem:[%s2589_s18 + $0x448] sm:$0xff]  ;;  %v684_v41 = vld [vmem:[%s2589_s18 + $0xc00] sm:$0xff]  ;;  %v1626_v47 = vpack.c.bf16 %v436_v40, %v428_v39 }
  0x9c   : > { %v685_v33 = vld [vmem:[%s2589_s18 + $0xc08] sm:$0xff]  ;;  %v1624_v37 = vpack.c.bf16 %v437_v32, %v429_v31  ;;  %v692_v42 = vld [vmem:[%s2589_s18 + $0xc40] sm:$0xff] }
  0x9d   : > { %v693_v34 = vld [vmem:[%s2589_s18 + $0xc48] sm:$0xff]  ;;  %v1882_v48 = vpack.c.bf16 %v692_v42, %v684_v41  ;;  %v444_v51 = vld [vmem:[%s2589_s18 + $0x480] sm:$0xff] }
  0x9e   : > { %1611 = vmatpush1.bf16.xpose.msra.mxu0 %v1610_v62  ;;  %v1880_v38 = vpack.c.bf16 %v693_v34, %v685_v33  ;;  %v445_v43 = vld [vmem:[%s2589_s18 + $0x488] sm:$0xff]  ;;  %v452_v52 = vld [vmem:[%s2589_s18 + $0x4c0] sm:$0xff] }
  0x9f   : > { %1613 = vmatprep.subr.bf16.mxu0 %v1612_v0  ;;  %v453_v44 = vld [vmem:[%s2589_s18 + $0x4c8] sm:$0xff]  ;;  %v700_v53 = vld [vmem:[%s2589_s18 + $0xc80] sm:$0xff]  ;;  %v1630_v59 = vpack.c.bf16 %v452_v52, %v444_v51 }
  0xa0   : > { %1867 = vmatpush1.bf16.xpose.msra.mxu1 %v1866_v63  ;;  %v701_v45 = vld [vmem:[%s2589_s18 + $0xc88] sm:$0xff]  ;;  %v1628_v49 = vpack.c.bf16 %v453_v44, %v445_v43  ;;  %v708_v54 = vld [vmem:[%s2589_s18 + $0xcc0] sm:$0xff] }
  0xa1   : > { %1869 = vmatprep.subr.bf16.mxu1 %v1868_v1  ;;  %v709_v46 = vld [vmem:[%s2589_s18 + $0xcc8] sm:$0xff]  ;;  %v1886_v60 = vpack.c.bf16 %v708_v54, %v700_v53  ;;  %v460_v63 = vld [vmem:[%s2589_s18 + $0x500] sm:$0xff] }
  0xa2   : > { %v1884_v50 = vpack.c.bf16 %v709_v46, %v701_v45  ;;  %v461_v55 = vld [vmem:[%s2589_s18 + $0x508] sm:$0xff]  ;;  %v468_v0 = vld [vmem:[%s2589_s18 + $0x540] sm:$0xff] }
  0xa3   : > { %v469_v56 = vld [vmem:[%s2589_s18 + $0x548] sm:$0xff]  ;;  %v716_v1 = vld [vmem:[%s2589_s18 + $0xd00] sm:$0xff]  ;;  %v1634_v7 = vpack.c.bf16 %v468_v0, %v460_v63  ;;  %v303_v63 = vld [vmem:[%s2589_s18 + $0x18] sm:$0xff] }
  0xa4   : > { %v717_v57 = vld [vmem:[%s2589_s18 + $0xd08] sm:$0xff]  ;;  %v1632_v61 = vpack.c.bf16 %v469_v56, %v461_v55  ;;  %v724_v2 = vld [vmem:[%s2589_s18 + $0xd40] sm:$0xff]  ;;  %v311_v0 = vld [vmem:[%s2589_s18 + $0x58] sm:$0xff] }
  0xa5   : > { %v725_v58 = vld [vmem:[%s2589_s18 + $0xd48] sm:$0xff]  ;;  %v1890_v8 = vpack.c.bf16 %v724_v2, %v716_v1  ;;  %v740_v14 = vld [vmem:[%s2589_s18 + $0xdc0] sm:$0xff]  ;;  %v559_v1 = vld [vmem:[%s2589_s18 + $0x818] sm:$0xff] }
  0xa6   : > { %1615 = vmatpush1.bf16.xpose.msra.mxu0 %v1614_v10  ;;  %v1888_v62 = vpack.c.bf16 %v725_v58, %v717_v57  ;;  %v477_v3 = vld [vmem:[%s2589_s18 + $0x588] sm:$0xff]  ;;  %v567_v2 = vld [vmem:[%s2589_s18 + $0x858] sm:$0xff] }
  0xa7   : > { %1617 = vmatprep.subr.bf16.mxu0 %v1616_v12  ;;  %v485_v4 = vld [vmem:[%s2589_s18 + $0x5c8] sm:$0xff]  ;;  %v484_v12 = vld [vmem:[%s2589_s18 + $0x5c0] sm:$0xff] }
  0xa8   : > { %1871 = vmatpush1.bf16.xpose.msra.mxu1 %v1870_v11  ;;  %v733_v5 = vld [vmem:[%s2589_s18 + $0xd88] sm:$0xff]  ;;  %v1636_v9 = vpack.c.bf16 %v485_v4, %v477_v3  ;;  %v476_v11 = vld [vmem:[%s2589_s18 + $0x580] sm:$0xff] }
  0xa9   : > { %1873 = vmatprep.subr.bf16.mxu1 %v1872_v13  ;;  %v741_v6 = vld [vmem:[%s2589_s18 + $0xdc8] sm:$0xff]  ;;  %v732_v13 = vld [vmem:[%s2589_s18 + $0xd80] sm:$0xff]  ;;  %v1638_v19 = vpack.c.bf16 %v484_v12, %v476_v11  ;;  %v319_v11 = vld [vmem:[%s2589_s18 + $0x98] sm:$0xff] }
  0xaa   : > { %v1892_v10 = vpack.c.bf16 %v741_v6, %v733_v5  ;;  %v493_v15 = vld [vmem:[%s2589_s18 + $0x608] sm:$0xff]  ;;  %v1894_v20 = vpack.c.bf16 %v740_v14, %v732_v13  ;;  %v1656_v5 = vpack.c.bf16 %v311_v0, %v303_v63  ;;  %v1912_v6 = vpack.c.bf16 %v567_v2, %v559_v1  ;;  %v327_v12 = vld [vmem:[%s2589_s18 + $0xd8] sm:$0xff] }
  0xab   : > { %v501_v16 = vld [vmem:[%s2589_s18 + $0x648] sm:$0xff]  ;;  %v575_v13 = vld [vmem:[%s2589_s18 + $0x898] sm:$0xff] }
  0xac   : > { %v749_v17 = vld [vmem:[%s2589_s18 + $0xe08] sm:$0xff]  ;;  %v1640_v21 = vpack.c.bf16 %v501_v16, %v493_v15  ;;  %v583_v14 = vld [vmem:[%s2589_s18 + $0x8d8] sm:$0xff]  ;;  %v292_v15 = vld [vmem:[#allocation3] sm:$0xff] }
  0xad   : > { %v757_v18 = vld [vmem:[%s2589_s18 + $0xe48] sm:$0xff]  ;;  %v639_v63 = vld [vmem:[%s2589_s18 + $0xa98] sm:$0xff] }
  0xae   : > { %1619 = vmatpush1.bf16.xpose.msra.mxu0 %v1618_v23  ;;  %v1896_v22 = vpack.c.bf16 %v757_v18, %v749_v17  ;;  %v492_v23 = vld [vmem:[%s2589_s18 + $0x600] sm:$0xff]  ;;  %v509_v27 = vld [vmem:[%s2589_s18 + $0x688] sm:$0xff]  ;;  %v1660_v18 = vpack.c.bf16 %v327_v12, %v319_v11  ;;  %v647_v0 = vld [vmem:[%s2589_s18 + $0xad8] sm:$0xff] }
  0xaf   : > { %1621 = vmatprep.subr.bf16.mxu0 %v1620_v25  ;;  %v748_v25 = vld [vmem:[%s2589_s18 + $0xe00] sm:$0xff]  ;;  %v517_v28 = vld [vmem:[%s2589_s18 + $0x6c8] sm:$0xff]  ;;  %v655_v11 = vld [vmem:[%s2589_s18 + $0xb18] sm:$0xff] }
  0xb0   : > { %1875 = vmatpush1.bf16.xpose.msra.mxu1 %v1874_v24  ;;  %v500_v24 = vld [vmem:[%s2589_s18 + $0x640] sm:$0xff]  ;;  %v765_v29 = vld [vmem:[%s2589_s18 + $0xe88] sm:$0xff]  ;;  %v1644_v33 = vpack.c.bf16 %v517_v28, %v509_v27  ;;  %v591_v27 = vld [vmem:[%s2589_s18 + $0x918] sm:$0xff] }
  0xb1   : > { %1877 = vmatprep.subr.bf16.mxu1 %v1876_v26  ;;  %v756_v26 = vld [vmem:[%s2589_s18 + $0xe40] sm:$0xff]  ;;  %v773_v30 = vld [vmem:[%s2589_s18 + $0xec8] sm:$0xff]  ;;  %v1642_v31 = vpack.c.bf16 %v500_v24, %v492_v23  ;;  %v574_v23 = vld [vmem:[%s2589_s18 + $0x890] sm:$0xff] }
  0xb2   : > { %v1898_v32 = vpack.c.bf16 %v756_v26, %v748_v25  ;;  %v1900_v34 = vpack.c.bf16 %v773_v30, %v765_v29  ;;  %v525_v39 = vld [vmem:[%s2589_s18 + $0x708] sm:$0xff]  ;;  %v582_v24 = vld [vmem:[%s2589_s18 + $0x8d0] sm:$0xff]  ;;  %v335_v25 = vld [vmem:[%s2589_s18 + $0x118] sm:$0xff] }
  0xb3   : > { %v533_v40 = vld [vmem:[%s2589_s18 + $0x748] sm:$0xff]  ;;  %v343_v26 = vld [vmem:[%s2589_s18 + $0x158] sm:$0xff]  ;;  %v1918_v30 = vpack.c.bf16 %v582_v24, %v574_v23 }
  0xb4   : > { %v781_v41 = vld [vmem:[%s2589_s18 + $0xf08] sm:$0xff]  ;;  %v1648_v45 = vpack.c.bf16 %v533_v40, %v525_v39  ;;  %v599_v28 = vld [vmem:[%s2589_s18 + $0x958] sm:$0xff] }
  0xb5   : > { %v789_v42 = vld [vmem:[%s2589_s18 + $0xf48] sm:$0xff]  ;;  %v607_v39 = vld [vmem:[%s2589_s18 + $0x998] sm:$0xff] }
  0xb6   : > { %1623 = vmatpush1.bf16.xpose.msra.mxu0 %v1622_v35  ;;  %v508_v35 = vld [vmem:[%s2589_s18 + $0x680] sm:$0xff]  ;;  %v1904_v46 = vpack.c.bf16 %v789_v42, %v781_v41  ;;  %v541_v51 = vld [vmem:[%s2589_s18 + $0x788] sm:$0xff]  ;;  %v615_v40 = vld [vmem:[%s2589_s18 + $0x9d8] sm:$0xff] }
  0xb7   : > { %1625 = vmatprep.subr.bf16.mxu0 %v1624_v37  ;;  %v764_v37 = vld [vmem:[%s2589_s18 + $0xe80] sm:$0xff]  ;;  %v549_v52 = vld [vmem:[%s2589_s18 + $0x7c8] sm:$0xff]  ;;  %v663_v12 = vld [vmem:[%s2589_s18 + $0xb58] sm:$0xff] }
  0xb8   : > { %1879 = vmatpush1.bf16.xpose.msra.mxu1 %v1878_v36  ;;  %v516_v36 = vld [vmem:[%s2589_s18 + $0x6c0] sm:$0xff]  ;;  %v797_v53 = vld [vmem:[%s2589_s18 + $0xf88] sm:$0xff]  ;;  %v1652_v57 = vpack.c.bf16 %v549_v52, %v541_v51  ;;  %v623_v51 = vld [vmem:[%s2589_s18 + $0xa18] sm:$0xff] }
  0xb9   : > { %1881 = vmatprep.subr.bf16.mxu1 %v1880_v38  ;;  %v772_v38 = vld [vmem:[%s2589_s18 + $0xec0] sm:$0xff]  ;;  %v1646_v43 = vpack.c.bf16 %v516_v36, %v508_v35  ;;  %v805_v54 = vld [vmem:[%s2589_s18 + $0xfc8] sm:$0xff]  ;;  %v590_v35 = vld [vmem:[%s2589_s18 + $0x910] sm:$0xff] }
  0xba   : > { %v1902_v44 = vpack.c.bf16 %v772_v38, %v764_v37  ;;  %v1908_v58 = vpack.c.bf16 %v805_v54, %v797_v53  ;;  %v598_v36 = vld [vmem:[%s2589_s18 + $0x950] sm:$0xff]  ;;  %v351_v37 = vld [vmem:[%s2589_s18 + $0x198] sm:$0xff] }
  0xbb   : > { %v359_v38 = vld [vmem:[%s2589_s18 + $0x1d8] sm:$0xff]  ;;  %v1922_v42 = vpack.c.bf16 %v598_v36, %v590_v35 }
  0xbc   : > { %v631_v52 = vld [vmem:[%s2589_s18 + $0xa58] sm:$0xff] }
  0xbd   : > { %v671_v23 = vld [vmem:[%s2589_s18 + $0xb98] sm:$0xff] }
  0xbe   : > { %1627 = vmatpush1.bf16.xpose.msra.mxu0 %v1626_v47  ;;  %v524_v47 = vld [vmem:[%s2589_s18 + $0x700] sm:$0xff]  ;;  %v679_v24 = vld [vmem:[%s2589_s18 + $0xbd8] sm:$0xff] }
  0xbf   : > { %1629 = vmatprep.subr.bf16.mxu0 %v1628_v49  ;;  %v780_v49 = vld [vmem:[%s2589_s18 + $0xf00] sm:$0xff]  ;;  %v687_v35 = vld [vmem:[%s2589_s18 + $0xc18] sm:$0xff] }
  0xc0   : > { %1883 = vmatpush1.bf16.xpose.msra.mxu1 %v1882_v48  ;;  %v532_v48 = vld [vmem:[%s2589_s18 + $0x740] sm:$0xff]  ;;  %v695_v36 = vld [vmem:[%s2589_s18 + $0xc58] sm:$0xff] }
  0xc1   : > { %1885 = vmatprep.subr.bf16.mxu1 %v1884_v50  ;;  %v788_v50 = vld [vmem:[%s2589_s18 + $0xf40] sm:$0xff]  ;;  %v1650_v55 = vpack.c.bf16 %v532_v48, %v524_v47  ;;  %v606_v47 = vld [vmem:[%s2589_s18 + $0x990] sm:$0xff] }
  0xc2   : > { %v1906_v56 = vpack.c.bf16 %v788_v50, %v780_v49  ;;  %v614_v48 = vld [vmem:[%s2589_s18 + $0x9d0] sm:$0xff]  ;;  %v367_v49 = vld [vmem:[%s2589_s18 + $0x218] sm:$0xff] }
  0xc3   : > { %v375_v50 = vld [vmem:[%s2589_s18 + $0x258] sm:$0xff]  ;;  %v1926_v54 = vpack.c.bf16 %v614_v48, %v606_v47 }
  0xc4   : > { %v703_v47 = vld [vmem:[%s2589_s18 + $0xc98] sm:$0xff] }
  0xc5   : > { %v711_v48 = vld [vmem:[%s2589_s18 + $0xcd8] sm:$0xff] }
  0xc6   : > { %1631 = vmatpush1.bf16.xpose.msra.mxu0 %v1630_v59  ;;  %v540_v59 = vld [vmem:[%s2589_s18 + $0x780] sm:$0xff] }
  0xc7   : > { %1633 = vmatprep.subr.bf16.mxu0 %v1632_v61  ;;  %v796_v61 = vld [vmem:[%s2589_s18 + $0xf80] sm:$0xff] }
  0xc8   : > { %1887 = vmatpush1.bf16.xpose.msra.mxu1 %v1886_v60  ;;  %v548_v60 = vld [vmem:[%s2589_s18 + $0x7c0] sm:$0xff] }
  0xc9   : > { %1889 = vmatprep.subr.bf16.mxu1 %v1888_v62  ;;  %v804_v62 = vld [vmem:[%s2589_s18 + $0xfc0] sm:$0xff]  ;;  %v1654_v3 = vpack.c.bf16 %v548_v60, %v540_v59  ;;  %v622_v59 = vld [vmem:[%s2589_s18 + $0xa10] sm:$0xff] }
  0xca   : > { %v1910_v4 = vpack.c.bf16 %v804_v62, %v796_v61  ;;  %v630_v60 = vld [vmem:[%s2589_s18 + $0xa50] sm:$0xff]  ;;  %v383_v61 = vld [vmem:[%s2589_s18 + $0x298] sm:$0xff] }
  0xcb   : > { %v391_v62 = vld [vmem:[%s2589_s18 + $0x2d8] sm:$0xff]  ;;  %v1930_v2 = vpack.c.bf16 %v630_v60, %v622_v59 }
  0xcc   : > { %v719_v59 = vld [vmem:[%s2589_s18 + $0xd18] sm:$0xff] }
  0xcd   : > { %v727_v60 = vld [vmem:[%s2589_s18 + $0xd58] sm:$0xff] }
  0xce   : > { %1635 = vmatpush1.bf16.xpose.msra.mxu0 %v1634_v7  ;;  %v302_v7 = vld [vmem:[%s2589_s18 + $0x10] sm:$0xff] }
  0xcf   : > { %1637 = vmatprep.subr.bf16.mxu0 %v1636_v9  ;;  %v558_v9 = vld [vmem:[%s2589_s18 + $0x810] sm:$0xff] }
  0xd0   : > { %1891 = vmatpush1.bf16.xpose.msra.mxu1 %v1890_v8  ;;  %v310_v8 = vld [vmem:[%s2589_s18 + $0x50] sm:$0xff] }
  0xd1   : > { %1893 = vmatprep.subr.bf16.mxu1 %v1892_v10  ;;  %v566_v10 = vld [vmem:[%s2589_s18 + $0x850] sm:$0xff]  ;;  %v1658_v16 = vpack.c.bf16 %v310_v8, %v302_v7 }
  0xd2   : > { %v1914_v17 = vpack.c.bf16 %v566_v10, %v558_v9  ;;  %v638_v7 = vld [vmem:[%s2589_s18 + $0xa90] sm:$0xff]  ;;  %v399_v9 = vld [vmem:[%s2589_s18 + $0x318] sm:$0xff] }
  0xd3   : > { %v646_v8 = vld [vmem:[%s2589_s18 + $0xad0] sm:$0xff]  ;;  %v407_v10 = vld [vmem:[%s2589_s18 + $0x358] sm:$0xff] }
  0xd6   : > { %1639 = vmatpush1.bf16.xpose.msra.mxu0 %v1638_v19  ;;  %v1916_v19 = vpack.c.bf16 %v583_v14, %v575_v13  ;;  %v1934_v14 = vpack.c.bf16 %v646_v8, %v638_v7  ;;  %v735_v7 = vld [vmem:[%s2589_s18 + $0xd98] sm:$0xff] }
  0xd7   : > { %1641 = vmatprep.subr.bf16.mxu0 %v1640_v21  ;;  %v318_v21 = vld [vmem:[%s2589_s18 + $0x90] sm:$0xff]  ;;  %v743_v8 = vld [vmem:[%s2589_s18 + $0xdd8] sm:$0xff] }
  0xd8   : > { %1895 = vmatpush1.bf16.xpose.msra.mxu1 %v1894_v20  ;;  %v295_v20 = vld [vmem:[#allocation3 + $0x18] sm:$0xff] }
  0xd9   : > { %1897 = vmatprep.subr.bf16.mxu1 %v1896_v22  ;;  %v326_v22 = vld [vmem:[%s2589_s18 + $0xd0] sm:$0xff] }
  0xda   : > { %v1662_v29 = vpack.c.bf16 %v326_v22, %v318_v21  ;;  %v415_v21 = vld [vmem:[%s2589_s18 + $0x398] sm:$0xff] }
  0xdb   : > { %v423_v22 = vld [vmem:[%s2589_s18 + $0x3d8] sm:$0xff] }
  0xde   : > { %1643 = vmatpush1.bf16.xpose.msra.mxu0 %v1642_v31  ;;  %v1664_v31 = vpack.c.bf16 %v343_v26, %v335_v25 }
  0xdf   : > { %1645 = vmatprep.subr.bf16.mxu0 %v1644_v33  ;;  %v334_v33 = vld [vmem:[%s2589_s18 + $0x110] sm:$0xff] }
  0xe0   : > { %1899 = vmatpush1.bf16.xpose.msra.mxu1 %v1898_v32  ;;  %v1920_v32 = vpack.c.bf16 %v599_v28, %v591_v27  ;;  %v1684_v27 = vpack.c.bf16 %v423_v22, %v415_v21  ;;  %v1940_v28 = vpack.c.bf16 %v679_v24, %v671_v23 }
  0xe1   : > { %1901 = vmatprep.subr.bf16.mxu1 %v1900_v34  ;;  %v342_v34 = vld [vmem:[%s2589_s18 + $0x150] sm:$0xff] }
  0xe2   : > { %v1666_v41 = vpack.c.bf16 %v342_v34, %v334_v33  ;;  %v431_v33 = vld [vmem:[%s2589_s18 + $0x418] sm:$0xff] }
  0xe3   : > { %v439_v34 = vld [vmem:[%s2589_s18 + $0x458] sm:$0xff] }
  0xe6   : > { %1647 = vmatpush1.bf16.xpose.msra.mxu0 %v1646_v43  ;;  %v1668_v43 = vpack.c.bf16 %v359_v38, %v351_v37 }
  0xe7   : > { %1649 = vmatprep.subr.bf16.mxu0 %v1648_v45  ;;  %v350_v45 = vld [vmem:[%s2589_s18 + $0x190] sm:$0xff] }
  0xe8   : > { %1903 = vmatpush1.bf16.xpose.msra.mxu1 %v1902_v44  ;;  %v1924_v44 = vpack.c.bf16 %v615_v40, %v607_v39  ;;  %v1688_v39 = vpack.c.bf16 %v439_v34, %v431_v33  ;;  %v1944_v40 = vpack.c.bf16 %v695_v36, %v687_v35 }
  0xe9   : > { %1905 = vmatprep.subr.bf16.mxu1 %v1904_v46  ;;  %v358_v46 = vld [vmem:[%s2589_s18 + $0x1d0] sm:$0xff] }
  0xea   : > { %v1670_v53 = vpack.c.bf16 %v358_v46, %v350_v45  ;;  %v447_v45 = vld [vmem:[%s2589_s18 + $0x498] sm:$0xff] }
  0xeb   : > { %v455_v46 = vld [vmem:[%s2589_s18 + $0x4d8] sm:$0xff] }
  0xee   : > { %1651 = vmatpush1.bf16.xpose.msra.mxu0 %v1650_v55  ;;  %v1672_v55 = vpack.c.bf16 %v375_v50, %v367_v49 }
  0xef   : > { %1653 = vmatprep.subr.bf16.mxu0 %v1652_v57  ;;  %v366_v57 = vld [vmem:[%s2589_s18 + $0x210] sm:$0xff] }
  0xf0   : > { %1907 = vmatpush1.bf16.xpose.msra.mxu1 %v1906_v56  ;;  %v1928_v56 = vpack.c.bf16 %v631_v52, %v623_v51  ;;  %v1692_v51 = vpack.c.bf16 %v455_v46, %v447_v45  ;;  %v1948_v52 = vpack.c.bf16 %v711_v48, %v703_v47 }
  0xf1   : > { %1909 = vmatprep.subr.bf16.mxu1 %v1908_v58  ;;  %v374_v58 = vld [vmem:[%s2589_s18 + $0x250] sm:$0xff] }
  0xf2   : > { %v1674_v1 = vpack.c.bf16 %v374_v58, %v366_v57  ;;  %v463_v57 = vld [vmem:[%s2589_s18 + $0x518] sm:$0xff] }
  0xf3   : > { %v471_v58 = vld [vmem:[%s2589_s18 + $0x558] sm:$0xff] }
  0xf6   : > { %1655 = vmatpush1.bf16.xpose.msra.mxu0 %v1654_v3  ;;  %v1676_v3 = vpack.c.bf16 %v391_v62, %v383_v61 }
  0xf7   : > { %1657 = vmatprep.subr.bf16.mxu0 %v1656_v5  ;;  %v382_v5 = vld [vmem:[%s2589_s18 + $0x290] sm:$0xff] }
  0xf8   : > { %1911 = vmatpush1.bf16.xpose.msra.mxu1 %v1910_v4  ;;  %v1932_v4 = vpack.c.bf16 %v647_v0, %v639_v63  ;;  %v1696_v63 = vpack.c.bf16 %v471_v58, %v463_v57  ;;  %v1952_v0 = vpack.c.bf16 %v727_v60, %v719_v59 }
  0xf9   : > { %1913 = vmatprep.subr.bf16.mxu1 %v1912_v6  ;;  %v390_v6 = vld [vmem:[%s2589_s18 + $0x2d0] sm:$0xff] }
  0xfa   : > { %v1678_v13 = vpack.c.bf16 %v390_v6, %v382_v5  ;;  %v479_v5 = vld [vmem:[%s2589_s18 + $0x598] sm:$0xff] }
  0xfb   : > { %v487_v6 = vld [vmem:[%s2589_s18 + $0x5d8] sm:$0xff] }
  0xfd   : > { %877 = vmatmul.mubr.f32.vlgmr.msra.gmra.mrb[0].mxu0 %v292_v15 }
  0xfe   : > { %1659 = vmatpush1.bf16.xpose.msra.mxu0 %v1658_v16  ;;  %947 = vmatprep.mubr.f32.mxu0 %v295_v20  ;;  %v1936_v16 = vpack.c.bf16 %v663_v12, %v655_v11  ;;  %v1700_v11 = vpack.c.bf16 %v487_v6, %v479_v5  ;;  %v1956_v12 = vpack.c.bf16 %v743_v8, %v735_v7 }
  0xff   : > { %1161 = vmatmul.mubr.f32.vlgmr.msra.gmra.mrb[0].mxu1 %v292_v15  ;;  %1661 = vmatprep.subr.bf16.mxu0 %v1660_v18  ;;  %v1680_v15 = vpack.c.bf16 %v407_v10, %v399_v9  ;;  %v406_v18 = vld [vmem:[%s2589_s18 + $0x350] sm:$0xff] }
 0x100   : > { %1915 = vmatpush1.bf16.xpose.msra.mxu1 %v1914_v17  ;;  %1231 = vmatprep.mubr.f32.mxu1 %v295_v20  ;;  %v398_v17 = vld [vmem:[%s2589_s18 + $0x310] sm:$0xff] }
 0x101   : > { %1917 = vmatprep.subr.bf16.mxu1 %v1916_v19  ;;  %v654_v19 = vld [vmem:[%s2589_s18 + $0xb10] sm:$0xff]  ;;  %v1682_v25 = vpack.c.bf16 %v406_v18, %v398_v17  ;;  %v495_v17 = vld [vmem:[%s2589_s18 + $0x618] sm:$0xff] }
 0x102   : > { %v662_v20 = vld [vmem:[%s2589_s18 + $0xb50] sm:$0xff]  ;;  %v503_v18 = vld [vmem:[%s2589_s18 + $0x658] sm:$0xff] }
 0x103   : > { %v1938_v26 = vpack.c.bf16 %v662_v20, %v654_v19  ;;  %v751_v19 = vld [vmem:[%s2589_s18 + $0xe18] sm:$0xff]  ;;  %v1704_v23 = vpack.c.bf16 %v503_v18, %v495_v17  ;;  %v294_v17 = vld [vmem:[#allocation3 + $0x10] sm:$0xff] }
 0x104   : > { %v759_v20 = vld [vmem:[%s2589_s18 + $0xe58] sm:$0xff] }
 0x105   : > { %v1960_v24 = vpack.c.bf16 %v759_v20, %v751_v19 }
 0x106   : > { %1663 = vmatpush1.bf16.xpose.msra.mxu0 %v1662_v29  ;;  %v414_v29 = vld [vmem:[%s2589_s18 + $0x390] sm:$0xff] }
 0x107   : > { %1665 = vmatprep.subr.bf16.mxu0 %v1664_v31  ;;  %v670_v31 = vld [vmem:[%s2589_s18 + $0xb90] sm:$0xff] }
 0x108   : > { %1919 = vmatpush1.bf16.xpose.msra.mxu1 %v1918_v30  ;;  %v422_v30 = vld [vmem:[%s2589_s18 + $0x3d0] sm:$0xff] }
 0x109   : > { %1921 = vmatprep.subr.bf16.mxu1 %v1920_v32  ;;  %v678_v32 = vld [vmem:[%s2589_s18 + $0xbd0] sm:$0xff]  ;;  %v1686_v37 = vpack.c.bf16 %v422_v30, %v414_v29  ;;  %v511_v29 = vld [vmem:[%s2589_s18 + $0x698] sm:$0xff] }
 0x10a   : > { %v1942_v38 = vpack.c.bf16 %v678_v32, %v670_v31  ;;  %v519_v30 = vld [vmem:[%s2589_s18 + $0x6d8] sm:$0xff] }
 0x10b   : > { %v767_v31 = vld [vmem:[%s2589_s18 + $0xe98] sm:$0xff]  ;;  %v1708_v35 = vpack.c.bf16 %v519_v30, %v511_v29  ;;  %v593_v29 = vld [vmem:[%s2589_s18 + $0x928] sm:$0xff] }
 0x10c   : > { %v775_v32 = vld [vmem:[%s2589_s18 + $0xed8] sm:$0xff]  ;;  %v601_v30 = vld [vmem:[%s2589_s18 + $0x968] sm:$0xff] }
 0x10d   : > { %v1964_v36 = vpack.c.bf16 %v775_v32, %v767_v31 }
 0x10e   : > { %1667 = vmatpush1.bf16.xpose.msra.mxu0 %v1666_v41  ;;  %v430_v41 = vld [vmem:[%s2589_s18 + $0x410] sm:$0xff] }
 0x10f   : > { %1669 = vmatprep.subr.bf16.mxu0 %v1668_v43  ;;  %v686_v43 = vld [vmem:[%s2589_s18 + $0xc10] sm:$0xff] }
 0x110   : > { %1923 = vmatpush1.bf16.xpose.msra.mxu1 %v1922_v42  ;;  %v438_v42 = vld [vmem:[%s2589_s18 + $0x450] sm:$0xff] }
 0x111   : > { %1925 = vmatprep.subr.bf16.mxu1 %v1924_v44  ;;  %v694_v44 = vld [vmem:[%s2589_s18 + $0xc50] sm:$0xff]  ;;  %v1690_v49 = vpack.c.bf16 %v438_v42, %v430_v41  ;;  %v527_v41 = vld [vmem:[%s2589_s18 + $0x718] sm:$0xff] }
 0x112   : > { %v1946_v50 = vpack.c.bf16 %v694_v44, %v686_v43  ;;  %v535_v42 = vld [vmem:[%s2589_s18 + $0x758] sm:$0xff] }
 0x113   : > { %v783_v43 = vld [vmem:[%s2589_s18 + $0xf18] sm:$0xff]  ;;  %v1712_v47 = vpack.c.bf16 %v535_v42, %v527_v41  ;;  %v609_v41 = vld [vmem:[%s2589_s18 + $0x9a8] sm:$0xff] }
 0x114   : > { %v791_v44 = vld [vmem:[%s2589_s18 + $0xf58] sm:$0xff]  ;;  %v617_v42 = vld [vmem:[%s2589_s18 + $0x9e8] sm:$0xff] }
 0x115   : > { %v1968_v48 = vpack.c.bf16 %v791_v44, %v783_v43 }
 0x116   : > { %1671 = vmatpush1.bf16.xpose.msra.mxu0 %v1670_v53  ;;  %v446_v53 = vld [vmem:[%s2589_s18 + $0x490] sm:$0xff] }
 0x117   : > { %1673 = vmatprep.subr.bf16.mxu0 %v1672_v55  ;;  %v702_v55 = vld [vmem:[%s2589_s18 + $0xc90] sm:$0xff] }
 0x118   : > { %1927 = vmatpush1.bf16.xpose.msra.mxu1 %v1926_v54  ;;  %v454_v54 = vld [vmem:[%s2589_s18 + $0x4d0] sm:$0xff] }
 0x119   : > { %1929 = vmatprep.subr.bf16.mxu1 %v1928_v56  ;;  %v710_v56 = vld [vmem:[%s2589_s18 + $0xcd0] sm:$0xff]  ;;  %v1694_v61 = vpack.c.bf16 %v454_v54, %v446_v53  ;;  %v543_v53 = vld [vmem:[%s2589_s18 + $0x798] sm:$0xff] }
 0x11a   : > { %v1950_v62 = vpack.c.bf16 %v710_v56, %v702_v55  ;;  %v551_v54 = vld [vmem:[%s2589_s18 + $0x7d8] sm:$0xff] }
 0x11b   : > { %v799_v55 = vld [vmem:[%s2589_s18 + $0xf98] sm:$0xff]  ;;  %v1716_v59 = vpack.c.bf16 %v551_v54, %v543_v53  ;;  %v625_v53 = vld [vmem:[%s2589_s18 + $0xa28] sm:$0xff] }
 0x11c   : > { %v807_v56 = vld [vmem:[%s2589_s18 + $0xfd8] sm:$0xff]  ;;  %v633_v54 = vld [vmem:[%s2589_s18 + $0xa68] sm:$0xff] }
 0x11d   : > { %v1972_v60 = vpack.c.bf16 %v807_v56, %v799_v55 }
 0x11e   : > { %1675 = vmatpush1.bf16.xpose.msra.mxu0 %v1674_v1  ;;  %v462_v1 = vld [vmem:[%s2589_s18 + $0x510] sm:$0xff] }
 0x11f   : > { %1677 = vmatprep.subr.bf16.mxu0 %v1676_v3  ;;  %v718_v3 = vld [vmem:[%s2589_s18 + $0xd10] sm:$0xff] }
 0x120   : > { %1931 = vmatpush1.bf16.xpose.msra.mxu1 %v1930_v2  ;;  %v470_v2 = vld [vmem:[%s2589_s18 + $0x550] sm:$0xff] }
 0x121   : > { %1933 = vmatprep.subr.bf16.mxu1 %v1932_v4  ;;  %v726_v4 = vld [vmem:[%s2589_s18 + $0xd50] sm:$0xff]  ;;  %v1698_v9 = vpack.c.bf16 %v470_v2, %v462_v1  ;;  %v305_v1 = vld [vmem:[%s2589_s18 + $0x28] sm:$0xff] }
 0x122   : > { %v1954_v10 = vpack.c.bf16 %v726_v4, %v718_v3  ;;  %v313_v2 = vld [vmem:[%s2589_s18 + $0x68] sm:$0xff] }
 0x123   : > { %v561_v3 = vld [vmem:[%s2589_s18 + $0x828] sm:$0xff]  ;;  %v1720_v7 = vpack.c.bf16 %v313_v2, %v305_v1 }
 0x124   : > { %v569_v4 = vld [vmem:[%s2589_s18 + $0x868] sm:$0xff] }
 0x125   : > { %v1976_v8 = vpack.c.bf16 %v569_v4, %v561_v3  ;;  %v641_v1 = vld [vmem:[%s2589_s18 + $0xaa8] sm:$0xff] }
 0x126   : > { %1679 = vmatpush1.bf16.xpose.msra.mxu0 %v1678_v13  ;;  %v478_v13 = vld [vmem:[%s2589_s18 + $0x590] sm:$0xff]  ;;  %v649_v2 = vld [vmem:[%s2589_s18 + $0xae8] sm:$0xff] }
 0x127   : > { %1681 = vmatprep.subr.bf16.mxu0 %v1680_v15  ;;  %v734_v15 = vld [vmem:[%s2589_s18 + $0xd90] sm:$0xff] }
 0x128   : > { %1935 = vmatpush1.bf16.xpose.msra.mxu1 %v1934_v14  ;;  %v486_v14 = vld [vmem:[%s2589_s18 + $0x5d0] sm:$0xff] }
 0x129   : > { %1937 = vmatprep.subr.bf16.mxu1 %v1936_v16  ;;  %v742_v16 = vld [vmem:[%s2589_s18 + $0xdd0] sm:$0xff]  ;;  %v1702_v21 = vpack.c.bf16 %v486_v14, %v478_v13  ;;  %v321_v13 = vld [vmem:[%s2589_s18 + $0xa8] sm:$0xff] }
 0x12a   : > { %v1958_v22 = vpack.c.bf16 %v742_v16, %v734_v15  ;;  %v329_v14 = vld [vmem:[%s2589_s18 + $0xe8] sm:$0xff] }
 0x12b   : > { %v577_v15 = vld [vmem:[%s2589_s18 + $0x8a8] sm:$0xff]  ;;  %v1724_v20 = vpack.c.bf16 %v329_v14, %v321_v13 }
 0x12c   : > { %v585_v16 = vld [vmem:[%s2589_s18 + $0x8e8] sm:$0xff] }
 0x12d   : > { %v657_v13 = vld [vmem:[%s2589_s18 + $0xb28] sm:$0xff] }
 0x12e   : > { %1683 = vmatpush1.bf16.xpose.msra.mxu0 %v1682_v25  ;;  %v494_v25 = vld [vmem:[%s2589_s18 + $0x610] sm:$0xff]  ;;  %v665_v14 = vld [vmem:[%s2589_s18 + $0xb68] sm:$0xff] }
 0x12f   : > { %1685 = vmatprep.subr.bf16.mxu0 %v1684_v27  ;;  %v750_v27 = vld [vmem:[%s2589_s18 + $0xe10] sm:$0xff] }
 0x130   : > { %1939 = vmatpush1.bf16.xpose.msra.mxu1 %v1938_v26  ;;  %v502_v26 = vld [vmem:[%s2589_s18 + $0x650] sm:$0xff] }
 0x131   : > { %1941 = vmatprep.subr.bf16.mxu1 %v1940_v28  ;;  %v758_v28 = vld [vmem:[%s2589_s18 + $0xe50] sm:$0xff]  ;;  %v1706_v33 = vpack.c.bf16 %v502_v26, %v494_v25  ;;  %v576_v25 = vld [vmem:[%s2589_s18 + $0x8a0] sm:$0xff] }
 0x132   : > { %v1962_v34 = vpack.c.bf16 %v758_v28, %v750_v27  ;;  %v584_v26 = vld [vmem:[%s2589_s18 + $0x8e0] sm:$0xff]  ;;  %v337_v27 = vld [vmem:[%s2589_s18 + $0x128] sm:$0xff] }
 0x133   : > { %v345_v28 = vld [vmem:[%s2589_s18 + $0x168] sm:$0xff]  ;;  %v1982_v32 = vpack.c.bf16 %v584_v26, %v576_v25 }
 0x134   : > { %v673_v25 = vld [vmem:[%s2589_s18 + $0xba8] sm:$0xff] }
 0x135   : > { %v681_v26 = vld [vmem:[%s2589_s18 + $0xbe8] sm:$0xff] }
 0x136   : > { %1687 = vmatpush1.bf16.xpose.msra.mxu0 %v1686_v37  ;;  %v510_v37 = vld [vmem:[%s2589_s18 + $0x690] sm:$0xff] }
 0x137   : > { %1689 = vmatprep.subr.bf16.mxu0 %v1688_v39  ;;  %v766_v39 = vld [vmem:[%s2589_s18 + $0xe90] sm:$0xff] }
 0x138   : > { %1943 = vmatpush1.bf16.xpose.msra.mxu1 %v1942_v38  ;;  %v518_v38 = vld [vmem:[%s2589_s18 + $0x6d0] sm:$0xff] }
 0x139   : > { %1945 = vmatprep.subr.bf16.mxu1 %v1944_v40  ;;  %v774_v40 = vld [vmem:[%s2589_s18 + $0xed0] sm:$0xff]  ;;  %v1710_v45 = vpack.c.bf16 %v518_v38, %v510_v37  ;;  %v592_v37 = vld [vmem:[%s2589_s18 + $0x920] sm:$0xff] }
 0x13a   : > { %v1966_v46 = vpack.c.bf16 %v774_v40, %v766_v39  ;;  %v600_v38 = vld [vmem:[%s2589_s18 + $0x960] sm:$0xff]  ;;  %v353_v39 = vld [vmem:[%s2589_s18 + $0x1a8] sm:$0xff] }
 0x13b   : > { %v361_v40 = vld [vmem:[%s2589_s18 + $0x1e8] sm:$0xff]  ;;  %v1986_v44 = vpack.c.bf16 %v600_v38, %v592_v37 }
 0x13c   : > { %v689_v37 = vld [vmem:[%s2589_s18 + $0xc28] sm:$0xff] }
 0x13d   : > { %v697_v38 = vld [vmem:[%s2589_s18 + $0xc68] sm:$0xff] }
 0x13e   : > { %1691 = vmatpush1.bf16.xpose.msra.mxu0 %v1690_v49  ;;  %v526_v49 = vld [vmem:[%s2589_s18 + $0x710] sm:$0xff] }
 0x13f   : > { %1693 = vmatprep.subr.bf16.mxu0 %v1692_v51  ;;  %v782_v51 = vld [vmem:[%s2589_s18 + $0xf10] sm:$0xff] }
 0x140   : > { %1947 = vmatpush1.bf16.xpose.msra.mxu1 %v1946_v50  ;;  %v534_v50 = vld [vmem:[%s2589_s18 + $0x750] sm:$0xff] }
 0x141   : > { %1949 = vmatprep.subr.bf16.mxu1 %v1948_v52  ;;  %v790_v52 = vld [vmem:[%s2589_s18 + $0xf50] sm:$0xff]  ;;  %v1714_v57 = vpack.c.bf16 %v534_v50, %v526_v49  ;;  %v608_v49 = vld [vmem:[%s2589_s18 + $0x9a0] sm:$0xff] }
 0x142   : > { %v1970_v58 = vpack.c.bf16 %v790_v52, %v782_v51  ;;  %v616_v50 = vld [vmem:[%s2589_s18 + $0x9e0] sm:$0xff]  ;;  %v369_v51 = vld [vmem:[%s2589_s18 + $0x228] sm:$0xff] }
 0x143   : > { %v377_v52 = vld [vmem:[%s2589_s18 + $0x268] sm:$0xff]  ;;  %v1990_v56 = vpack.c.bf16 %v616_v50, %v608_v49 }
 0x144   : > { %v705_v49 = vld [vmem:[%s2589_s18 + $0xca8] sm:$0xff] }
 0x145   : > { %v713_v50 = vld [vmem:[%s2589_s18 + $0xce8] sm:$0xff] }
 0x146   : > { %1695 = vmatpush1.bf16.xpose.msra.mxu0 %v1694_v61  ;;  %v542_v61 = vld [vmem:[%s2589_s18 + $0x790] sm:$0xff] }
 0x147   : > { %1697 = vmatprep.subr.bf16.mxu0 %v1696_v63  ;;  %v798_v63 = vld [vmem:[%s2589_s18 + $0xf90] sm:$0xff] }
 0x148   : > { %1951 = vmatpush1.bf16.xpose.msra.mxu1 %v1950_v62  ;;  %v550_v62 = vld [vmem:[%s2589_s18 + $0x7d0] sm:$0xff] }
 0x149   : > { %1953 = vmatprep.subr.bf16.mxu1 %v1952_v0  ;;  %v806_v0 = vld [vmem:[%s2589_s18 + $0xfd0] sm:$0xff]  ;;  %v1718_v5 = vpack.c.bf16 %v550_v62, %v542_v61  ;;  %v624_v61 = vld [vmem:[%s2589_s18 + $0xa20] sm:$0xff] }
 0x14a   : > { %v1974_v6 = vpack.c.bf16 %v806_v0, %v798_v63  ;;  %v632_v62 = vld [vmem:[%s2589_s18 + $0xa60] sm:$0xff]  ;;  %v385_v63 = vld [vmem:[%s2589_s18 + $0x2a8] sm:$0xff] }
 0x14b   : > { %v393_v0 = vld [vmem:[%s2589_s18 + $0x2e8] sm:$0xff]  ;;  %v1994_v4 = vpack.c.bf16 %v632_v62, %v624_v61 }
 0x14c   : > { %v721_v61 = vld [vmem:[%s2589_s18 + $0xd28] sm:$0xff] }
 0x14d   : > { %v729_v62 = vld [vmem:[%s2589_s18 + $0xd68] sm:$0xff] }
 0x14e   : > { %1699 = vmatpush1.bf16.xpose.msra.mxu0 %v1698_v9  ;;  %v304_v9 = vld [vmem:[%s2589_s18 + $0x20] sm:$0xff] }
 0x14f   : > { %1701 = vmatprep.subr.bf16.mxu0 %v1700_v11  ;;  %v560_v11 = vld [vmem:[%s2589_s18 + $0x820] sm:$0xff] }
 0x150   : > { %1955 = vmatpush1.bf16.xpose.msra.mxu1 %v1954_v10  ;;  %v312_v10 = vld [vmem:[%s2589_s18 + $0x60] sm:$0xff] }
 0x151   : > { %1957 = vmatprep.subr.bf16.mxu1 %v1956_v12  ;;  %v568_v12 = vld [vmem:[%s2589_s18 + $0x860] sm:$0xff]  ;;  %v1722_v18 = vpack.c.bf16 %v312_v10, %v304_v9 }
 0x152   : > { %v1978_v19 = vpack.c.bf16 %v568_v12, %v560_v11  ;;  %v640_v9 = vld [vmem:[%s2589_s18 + $0xaa0] sm:$0xff]  ;;  %v401_v11 = vld [vmem:[%s2589_s18 + $0x328] sm:$0xff] }
 0x153   : > { %v648_v10 = vld [vmem:[%s2589_s18 + $0xae0] sm:$0xff]  ;;  %v409_v12 = vld [vmem:[%s2589_s18 + $0x368] sm:$0xff] }
 0x156   : > { %1703 = vmatpush1.bf16.xpose.msra.mxu0 %v1702_v21  ;;  %v1980_v21 = vpack.c.bf16 %v585_v16, %v577_v15  ;;  %v1998_v16 = vpack.c.bf16 %v648_v10, %v640_v9  ;;  %v737_v9 = vld [vmem:[%s2589_s18 + $0xda8] sm:$0xff] }
 0x157   : > { %1705 = vmatprep.subr.bf16.mxu0 %v1704_v23  ;;  %v320_v23 = vld [vmem:[%s2589_s18 + $0xa0] sm:$0xff]  ;;  %v745_v10 = vld [vmem:[%s2589_s18 + $0xde8] sm:$0xff] }
 0x158   : > { %1959 = vmatpush1.bf16.xpose.msra.mxu1 %v1958_v22  ;;  %v297_v22 = vld [vmem:[#allocation3 + $0x28] sm:$0xff] }
 0x159   : > { %1961 = vmatprep.subr.bf16.mxu1 %v1960_v24  ;;  %v328_v24 = vld [vmem:[%s2589_s18 + $0xe0] sm:$0xff] }
 0x15a   : > { %v1726_v31 = vpack.c.bf16 %v328_v24, %v320_v23  ;;  %v417_v23 = vld [vmem:[%s2589_s18 + $0x3a8] sm:$0xff] }
 0x15b   : > { %v425_v24 = vld [vmem:[%s2589_s18 + $0x3e8] sm:$0xff] }
 0x15e   : > { %1707 = vmatpush1.bf16.xpose.msra.mxu0 %v1706_v33  ;;  %v1728_v33 = vpack.c.bf16 %v345_v28, %v337_v27 }
 0x15f   : > { %1709 = vmatprep.subr.bf16.mxu0 %v1708_v35  ;;  %v336_v35 = vld [vmem:[%s2589_s18 + $0x120] sm:$0xff] }
 0x160   : > { %1963 = vmatpush1.bf16.xpose.msra.mxu1 %v1962_v34  ;;  %v1984_v34 = vpack.c.bf16 %v601_v30, %v593_v29  ;;  %v1748_v29 = vpack.c.bf16 %v425_v24, %v417_v23  ;;  %v2004_v30 = vpack.c.bf16 %v681_v26, %v673_v25 }
 0x161   : > { %1965 = vmatprep.subr.bf16.mxu1 %v1964_v36  ;;  %v344_v36 = vld [vmem:[%s2589_s18 + $0x160] sm:$0xff] }
 0x162   : > { %v1730_v43 = vpack.c.bf16 %v344_v36, %v336_v35  ;;  %v433_v35 = vld [vmem:[%s2589_s18 + $0x428] sm:$0xff] }
 0x163   : > { %v441_v36 = vld [vmem:[%s2589_s18 + $0x468] sm:$0xff] }
 0x166   : > { %1711 = vmatpush1.bf16.xpose.msra.mxu0 %v1710_v45  ;;  %v1732_v45 = vpack.c.bf16 %v361_v40, %v353_v39 }
 0x167   : > { %1713 = vmatprep.subr.bf16.mxu0 %v1712_v47  ;;  %v352_v47 = vld [vmem:[%s2589_s18 + $0x1a0] sm:$0xff] }
 0x168   : > { %1967 = vmatpush1.bf16.xpose.msra.mxu1 %v1966_v46  ;;  %v1988_v46 = vpack.c.bf16 %v617_v42, %v609_v41  ;;  %v1752_v41 = vpack.c.bf16 %v441_v36, %v433_v35  ;;  %v2008_v42 = vpack.c.bf16 %v697_v38, %v689_v37 }
 0x169   : > { %1969 = vmatprep.subr.bf16.mxu1 %v1968_v48  ;;  %v360_v48 = vld [vmem:[%s2589_s18 + $0x1e0] sm:$0xff] }
 0x16a   : > { %v1734_v55 = vpack.c.bf16 %v360_v48, %v352_v47  ;;  %v449_v47 = vld [vmem:[%s2589_s18 + $0x4a8] sm:$0xff] }
 0x16b   : > { %v457_v48 = vld [vmem:[%s2589_s18 + $0x4e8] sm:$0xff] }
 0x16e   : > { %1715 = vmatpush1.bf16.xpose.msra.mxu0 %v1714_v57  ;;  %v1736_v57 = vpack.c.bf16 %v377_v52, %v369_v51 }
 0x16f   : > { %1717 = vmatprep.subr.bf16.mxu0 %v1716_v59  ;;  %v368_v59 = vld [vmem:[%s2589_s18 + $0x220] sm:$0xff] }
 0x170   : > { %1971 = vmatpush1.bf16.xpose.msra.mxu1 %v1970_v58  ;;  %v1992_v58 = vpack.c.bf16 %v633_v54, %v625_v53  ;;  %v1756_v53 = vpack.c.bf16 %v457_v48, %v449_v47  ;;  %v2012_v54 = vpack.c.bf16 %v713_v50, %v705_v49 }
 0x171   : > { %1973 = vmatprep.subr.bf16.mxu1 %v1972_v60  ;;  %v376_v60 = vld [vmem:[%s2589_s18 + $0x260] sm:$0xff] }
 0x172   : > { %v1738_v3 = vpack.c.bf16 %v376_v60, %v368_v59  ;;  %v465_v59 = vld [vmem:[%s2589_s18 + $0x528] sm:$0xff] }
 0x173   : > { %v473_v60 = vld [vmem:[%s2589_s18 + $0x568] sm:$0xff] }
 0x176   : > { %1719 = vmatpush1.bf16.xpose.msra.mxu0 %v1718_v5  ;;  %v1740_v5 = vpack.c.bf16 %v393_v0, %v385_v63 }
 0x177   : > { %1721 = vmatprep.subr.bf16.mxu0 %v1720_v7  ;;  %v384_v7 = vld [vmem:[%s2589_s18 + $0x2a0] sm:$0xff] }
 0x178   : > { %1975 = vmatpush1.bf16.xpose.msra.mxu1 %v1974_v6  ;;  %v1996_v6 = vpack.c.bf16 %v649_v2, %v641_v1  ;;  %v1760_v1 = vpack.c.bf16 %v473_v60, %v465_v59  ;;  %v2016_v2 = vpack.c.bf16 %v729_v62, %v721_v61 }
 0x179   : > { %1977 = vmatprep.subr.bf16.mxu1 %v1976_v8  ;;  %v392_v8 = vld [vmem:[%s2589_s18 + $0x2e0] sm:$0xff] }
 0x17a   : > { %v1742_v15 = vpack.c.bf16 %v392_v8, %v384_v7  ;;  %v481_v7 = vld [vmem:[%s2589_s18 + $0x5a8] sm:$0xff] }
 0x17b   : > { %v489_v8 = vld [vmem:[%s2589_s18 + $0x5e8] sm:$0xff] }
 0x17d   : > { %948 = vmatmul.mubr.f32.vlgmr.msra.gmra.mrb[0].mxu0 %v294_v17 }
 0x17e   : > { %1723 = vmatpush1.bf16.xpose.msra.mxu0 %v1722_v18  ;;  %1018 = vmatprep.mubr.f32.mxu0 %v297_v22  ;;  %v2000_v18 = vpack.c.bf16 %v665_v14, %v657_v13  ;;  %v1764_v13 = vpack.c.bf16 %v489_v8, %v481_v7  ;;  %v2020_v14 = vpack.c.bf16 %v745_v10, %v737_v9 }
 0x17f   : > { %1232 = vmatmul.mubr.f32.vlgmr.msra.gmra.mrb[0].mxu1 %v294_v17  ;;  %1725 = vmatprep.subr.bf16.mxu0 %v1724_v20  ;;  %v1744_v17 = vpack.c.bf16 %v409_v12, %v401_v11  ;;  %v408_v20 = vld [vmem:[%s2589_s18 + $0x360] sm:$0xff] }
 0x180   : > { %1979 = vmatpush1.bf16.xpose.msra.mxu1 %v1978_v19  ;;  %1302 = vmatprep.mubr.f32.mxu1 %v297_v22  ;;  %v400_v19 = vld [vmem:[%s2589_s18 + $0x320] sm:$0xff] }
 0x181   : > { %1981 = vmatprep.subr.bf16.mxu1 %v1980_v21  ;;  %v656_v21 = vld [vmem:[%s2589_s18 + $0xb20] sm:$0xff]  ;;  %v1746_v27 = vpack.c.bf16 %v408_v20, %v400_v19  ;;  %v497_v19 = vld [vmem:[%s2589_s18 + $0x628] sm:$0xff] }
 0x182   : > { %v664_v22 = vld [vmem:[%s2589_s18 + $0xb60] sm:$0xff]  ;;  %v505_v20 = vld [vmem:[%s2589_s18 + $0x668] sm:$0xff] }
 0x183   : > { %v2002_v28 = vpack.c.bf16 %v664_v22, %v656_v21  ;;  %v753_v21 = vld [vmem:[%s2589_s18 + $0xe28] sm:$0xff]  ;;  %v1768_v25 = vpack.c.bf16 %v505_v20, %v497_v19  ;;  %v296_v19 = vld [vmem:[#allocation3 + $0x20] sm:$0xff] }
 0x184   : > { %v761_v22 = vld [vmem:[%s2589_s18 + $0xe68] sm:$0xff] }
 0x185   : > { %v2024_v26 = vpack.c.bf16 %v761_v22, %v753_v21 }
 0x186   : > { %1727 = vmatpush1.bf16.xpose.msra.mxu0 %v1726_v31  ;;  %v416_v31 = vld [vmem:[%s2589_s18 + $0x3a0] sm:$0xff] }
 0x187   : > { %1729 = vmatprep.subr.bf16.mxu0 %v1728_v33  ;;  %v672_v33 = vld [vmem:[%s2589_s18 + $0xba0] sm:$0xff] }
 0x188   : > { %1983 = vmatpush1.bf16.xpose.msra.mxu1 %v1982_v32  ;;  %v424_v32 = vld [vmem:[%s2589_s18 + $0x3e0] sm:$0xff] }
 0x189   : > { %1985 = vmatprep.subr.bf16.mxu1 %v1984_v34  ;;  %v680_v34 = vld [vmem:[%s2589_s18 + $0xbe0] sm:$0xff]  ;;  %v1750_v39 = vpack.c.bf16 %v424_v32, %v416_v31  ;;  %v513_v31 = vld [vmem:[%s2589_s18 + $0x6a8] sm:$0xff] }
 0x18a   : > { %v2006_v40 = vpack.c.bf16 %v680_v34, %v672_v33  ;;  %v521_v32 = vld [vmem:[%s2589_s18 + $0x6e8] sm:$0xff] }
 0x18b   : > { %v769_v33 = vld [vmem:[%s2589_s18 + $0xea8] sm:$0xff]  ;;  %v1772_v37 = vpack.c.bf16 %v521_v32, %v513_v31  ;;  %v595_v31 = vld [vmem:[%s2589_s18 + $0x938] sm:$0xff] }
 0x18c   : > { %v777_v34 = vld [vmem:[%s2589_s18 + $0xee8] sm:$0xff]  ;;  %v603_v32 = vld [vmem:[%s2589_s18 + $0x978] sm:$0xff] }
 0x18d   : > { %v2028_v38 = vpack.c.bf16 %v777_v34, %v769_v33 }
 0x18e   : > { %1731 = vmatpush1.bf16.xpose.msra.mxu0 %v1730_v43  ;;  %v432_v43 = vld [vmem:[%s2589_s18 + $0x420] sm:$0xff] }
 0x18f   : > { %1733 = vmatprep.subr.bf16.mxu0 %v1732_v45  ;;  %v688_v45 = vld [vmem:[%s2589_s18 + $0xc20] sm:$0xff] }
 0x190   : > { %1987 = vmatpush1.bf16.xpose.msra.mxu1 %v1986_v44  ;;  %v440_v44 = vld [vmem:[%s2589_s18 + $0x460] sm:$0xff] }
 0x191   : > { %1989 = vmatprep.subr.bf16.mxu1 %v1988_v46  ;;  %v696_v46 = vld [vmem:[%s2589_s18 + $0xc60] sm:$0xff]  ;;  %v1754_v51 = vpack.c.bf16 %v440_v44, %v432_v43  ;;  %v529_v43 = vld [vmem:[%s2589_s18 + $0x728] sm:$0xff] }
 0x192   : > { %v2010_v52 = vpack.c.bf16 %v696_v46, %v688_v45  ;;  %v537_v44 = vld [vmem:[%s2589_s18 + $0x768] sm:$0xff] }
 0x193   : > { %v785_v45 = vld [vmem:[%s2589_s18 + $0xf28] sm:$0xff]  ;;  %v1776_v49 = vpack.c.bf16 %v537_v44, %v529_v43  ;;  %v611_v43 = vld [vmem:[%s2589_s18 + $0x9b8] sm:$0xff] }
 0x194   : > { %v793_v46 = vld [vmem:[%s2589_s18 + $0xf68] sm:$0xff]  ;;  %v619_v44 = vld [vmem:[%s2589_s18 + $0x9f8] sm:$0xff] }
 0x195   : > { %v2032_v50 = vpack.c.bf16 %v793_v46, %v785_v45 }
 0x196   : > { %1735 = vmatpush1.bf16.xpose.msra.mxu0 %v1734_v55  ;;  %v448_v55 = vld [vmem:[%s2589_s18 + $0x4a0] sm:$0xff] }
 0x197   : > { %1737 = vmatprep.subr.bf16.mxu0 %v1736_v57  ;;  %v704_v57 = vld [vmem:[%s2589_s18 + $0xca0] sm:$0xff] }
 0x198   : > { %1991 = vmatpush1.bf16.xpose.msra.mxu1 %v1990_v56  ;;  %v456_v56 = vld [vmem:[%s2589_s18 + $0x4e0] sm:$0xff] }
 0x199   : > { %1993 = vmatprep.subr.bf16.mxu1 %v1992_v58  ;;  %v712_v58 = vld [vmem:[%s2589_s18 + $0xce0] sm:$0xff]  ;;  %v1758_v63 = vpack.c.bf16 %v456_v56, %v448_v55  ;;  %v545_v55 = vld [vmem:[%s2589_s18 + $0x7a8] sm:$0xff] }
 0x19a   : > { %v2014_v0 = vpack.c.bf16 %v712_v58, %v704_v57  ;;  %v553_v56 = vld [vmem:[%s2589_s18 + $0x7e8] sm:$0xff] }
 0x19b   : > { %v801_v57 = vld [vmem:[%s2589_s18 + $0xfa8] sm:$0xff]  ;;  %v1780_v61 = vpack.c.bf16 %v553_v56, %v545_v55  ;;  %v627_v55 = vld [vmem:[%s2589_s18 + $0xa38] sm:$0xff] }
 0x19c   : > { %v809_v58 = vld [vmem:[%s2589_s18 + $0xfe8] sm:$0xff]  ;;  %v635_v56 = vld [vmem:[%s2589_s18 + $0xa78] sm:$0xff] }
 0x19d   : > { %v2036_v62 = vpack.c.bf16 %v809_v58, %v801_v57 }
 0x19e   : > { %1739 = vmatpush1.bf16.xpose.msra.mxu0 %v1738_v3  ;;  %v464_v3 = vld [vmem:[%s2589_s18 + $0x520] sm:$0xff] }
 0x19f   : > { %1741 = vmatprep.subr.bf16.mxu0 %v1740_v5  ;;  %v720_v5 = vld [vmem:[%s2589_s18 + $0xd20] sm:$0xff] }
 0x1a0   : > { %1995 = vmatpush1.bf16.xpose.msra.mxu1 %v1994_v4  ;;  %v472_v4 = vld [vmem:[%s2589_s18 + $0x560] sm:$0xff] }
 0x1a1   : > { %1997 = vmatprep.subr.bf16.mxu1 %v1996_v6  ;;  %v728_v6 = vld [vmem:[%s2589_s18 + $0xd60] sm:$0xff]  ;;  %v1762_v11 = vpack.c.bf16 %v472_v4, %v464_v3  ;;  %v307_v3 = vld [vmem:[%s2589_s18 + $0x38] sm:$0xff] }
 0x1a2   : > { %v2018_v12 = vpack.c.bf16 %v728_v6, %v720_v5  ;;  %v315_v4 = vld [vmem:[%s2589_s18 + $0x78] sm:$0xff] }
 0x1a3   : > { %v563_v5 = vld [vmem:[%s2589_s18 + $0x838] sm:$0xff]  ;;  %v1784_v9 = vpack.c.bf16 %v315_v4, %v307_v3 }
 0x1a4   : > { %v571_v6 = vld [vmem:[%s2589_s18 + $0x878] sm:$0xff] }
 0x1a5   : > { %v2040_v10 = vpack.c.bf16 %v571_v6, %v563_v5  ;;  %v643_v3 = vld [vmem:[%s2589_s18 + $0xab8] sm:$0xff] }
 0x1a6   : > { %1743 = vmatpush1.bf16.xpose.msra.mxu0 %v1742_v15  ;;  %v480_v15 = vld [vmem:[%s2589_s18 + $0x5a0] sm:$0xff]  ;;  %v651_v4 = vld [vmem:[%s2589_s18 + $0xaf8] sm:$0xff] }
 0x1a7   : > { %1745 = vmatprep.subr.bf16.mxu0 %v1744_v17  ;;  %v736_v17 = vld [vmem:[%s2589_s18 + $0xda0] sm:$0xff] }
 0x1a8   : > { %1999 = vmatpush1.bf16.xpose.msra.mxu1 %v1998_v16  ;;  %v488_v16 = vld [vmem:[%s2589_s18 + $0x5e0] sm:$0xff] }
 0x1a9   : > { %2001 = vmatprep.subr.bf16.mxu1 %v2000_v18  ;;  %v744_v18 = vld [vmem:[%s2589_s18 + $0xde0] sm:$0xff]  ;;  %v1766_v23 = vpack.c.bf16 %v488_v16, %v480_v15  ;;  %v323_v15 = vld [vmem:[%s2589_s18 + $0xb8] sm:$0xff] }
 0x1aa   : > { %v2022_v24 = vpack.c.bf16 %v744_v18, %v736_v17  ;;  %v331_v16 = vld [vmem:[%s2589_s18 + $0xf8] sm:$0xff] }
 0x1ab   : > { %v579_v17 = vld [vmem:[%s2589_s18 + $0x8b8] sm:$0xff]  ;;  %v1788_v22 = vpack.c.bf16 %v331_v16, %v323_v15 }
 0x1ac   : > { %v587_v18 = vld [vmem:[%s2589_s18 + $0x8f8] sm:$0xff] }
 0x1ad   : > { %v659_v15 = vld [vmem:[%s2589_s18 + $0xb38] sm:$0xff] }
 0x1ae   : > { %1747 = vmatpush1.bf16.xpose.msra.mxu0 %v1746_v27  ;;  %v496_v27 = vld [vmem:[%s2589_s18 + $0x620] sm:$0xff]  ;;  %v667_v16 = vld [vmem:[%s2589_s18 + $0xb78] sm:$0xff] }
 0x1af   : > { %1749 = vmatprep.subr.bf16.mxu0 %v1748_v29  ;;  %v752_v29 = vld [vmem:[%s2589_s18 + $0xe20] sm:$0xff] }
 0x1b0   : > { %2003 = vmatpush1.bf16.xpose.msra.mxu1 %v2002_v28  ;;  %v504_v28 = vld [vmem:[%s2589_s18 + $0x660] sm:$0xff] }
 0x1b1   : > { %2005 = vmatprep.subr.bf16.mxu1 %v2004_v30  ;;  %v760_v30 = vld [vmem:[%s2589_s18 + $0xe60] sm:$0xff]  ;;  %v1770_v35 = vpack.c.bf16 %v504_v28, %v496_v27  ;;  %v578_v27 = vld [vmem:[%s2589_s18 + $0x8b0] sm:$0xff] }
 0x1b2   : > { %v2026_v36 = vpack.c.bf16 %v760_v30, %v752_v29  ;;  %v586_v28 = vld [vmem:[%s2589_s18 + $0x8f0] sm:$0xff]  ;;  %v339_v29 = vld [vmem:[%s2589_s18 + $0x138] sm:$0xff] }
 0x1b3   : > { %v347_v30 = vld [vmem:[%s2589_s18 + $0x178] sm:$0xff]  ;;  %v2046_v34 = vpack.c.bf16 %v586_v28, %v578_v27 }
 0x1b4   : > { %v675_v27 = vld [vmem:[%s2589_s18 + $0xbb8] sm:$0xff] }
 0x1b5   : > { %v683_v28 = vld [vmem:[%s2589_s18 + $0xbf8] sm:$0xff] }
 0x1b6   : > { %1751 = vmatpush1.bf16.xpose.msra.mxu0 %v1750_v39  ;;  %v512_v39 = vld [vmem:[%s2589_s18 + $0x6a0] sm:$0xff] }
 0x1b7   : > { %1753 = vmatprep.subr.bf16.mxu0 %v1752_v41  ;;  %v768_v41 = vld [vmem:[%s2589_s18 + $0xea0] sm:$0xff] }
 0x1b8   : > { %2007 = vmatpush1.bf16.xpose.msra.mxu1 %v2006_v40  ;;  %v520_v40 = vld [vmem:[%s2589_s18 + $0x6e0] sm:$0xff] }
 0x1b9   : > { %2009 = vmatprep.subr.bf16.mxu1 %v2008_v42  ;;  %v776_v42 = vld [vmem:[%s2589_s18 + $0xee0] sm:$0xff]  ;;  %v1774_v47 = vpack.c.bf16 %v520_v40, %v512_v39  ;;  %v594_v39 = vld [vmem:[%s2589_s18 + $0x930] sm:$0xff] }
 0x1ba   : > { %v2030_v48 = vpack.c.bf16 %v776_v42, %v768_v41  ;;  %v602_v40 = vld [vmem:[%s2589_s18 + $0x970] sm:$0xff]  ;;  %v355_v41 = vld [vmem:[%s2589_s18 + $0x1b8] sm:$0xff] }
 0x1bb   : > { %v363_v42 = vld [vmem:[%s2589_s18 + $0x1f8] sm:$0xff]  ;;  %v2050_v46 = vpack.c.bf16 %v602_v40, %v594_v39 }
 0x1bc   : > { %v691_v39 = vld [vmem:[%s2589_s18 + $0xc38] sm:$0xff] }
 0x1bd   : > { %v699_v40 = vld [vmem:[%s2589_s18 + $0xc78] sm:$0xff] }
 0x1be   : > { %1755 = vmatpush1.bf16.xpose.msra.mxu0 %v1754_v51  ;;  %v528_v51 = vld [vmem:[%s2589_s18 + $0x720] sm:$0xff] }
 0x1bf   : > { %1757 = vmatprep.subr.bf16.mxu0 %v1756_v53  ;;  %v784_v53 = vld [vmem:[%s2589_s18 + $0xf20] sm:$0xff] }
 0x1c0   : > { %2011 = vmatpush1.bf16.xpose.msra.mxu1 %v2010_v52  ;;  %v536_v52 = vld [vmem:[%s2589_s18 + $0x760] sm:$0xff] }
 0x1c1   : > { %2013 = vmatprep.subr.bf16.mxu1 %v2012_v54  ;;  %v792_v54 = vld [vmem:[%s2589_s18 + $0xf60] sm:$0xff]  ;;  %v1778_v59 = vpack.c.bf16 %v536_v52, %v528_v51  ;;  %v610_v51 = vld [vmem:[%s2589_s18 + $0x9b0] sm:$0xff] }
 0x1c2   : > { %v2034_v60 = vpack.c.bf16 %v792_v54, %v784_v53  ;;  %v618_v52 = vld [vmem:[%s2589_s18 + $0x9f0] sm:$0xff]  ;;  %v371_v53 = vld [vmem:[%s2589_s18 + $0x238] sm:$0xff] }
 0x1c3   : > { %v379_v54 = vld [vmem:[%s2589_s18 + $0x278] sm:$0xff]  ;;  %v2054_v58 = vpack.c.bf16 %v618_v52, %v610_v51 }
 0x1c4   : > { %v707_v51 = vld [vmem:[%s2589_s18 + $0xcb8] sm:$0xff] }
 0x1c5   : > { %v715_v52 = vld [vmem:[%s2589_s18 + $0xcf8] sm:$0xff] }
 0x1c6   : > { %1759 = vmatpush1.bf16.xpose.msra.mxu0 %v1758_v63  ;;  %v544_v63 = vld [vmem:[%s2589_s18 + $0x7a0] sm:$0xff] }
 0x1c7   : > { %1761 = vmatprep.subr.bf16.mxu0 %v1760_v1  ;;  %v800_v1 = vld [vmem:[%s2589_s18 + $0xfa0] sm:$0xff] }
 0x1c8   : > { %2015 = vmatpush1.bf16.xpose.msra.mxu1 %v2014_v0  ;;  %v552_v0 = vld [vmem:[%s2589_s18 + $0x7e0] sm:$0xff] }
 0x1c9   : > { %2017 = vmatprep.subr.bf16.mxu1 %v2016_v2  ;;  %v808_v2 = vld [vmem:[%s2589_s18 + $0xfe0] sm:$0xff]  ;;  %v1782_v7 = vpack.c.bf16 %v552_v0, %v544_v63  ;;  %v626_v63 = vld [vmem:[%s2589_s18 + $0xa30] sm:$0xff] }
 0x1ca   : > { %v2038_v8 = vpack.c.bf16 %v808_v2, %v800_v1  ;;  %v634_v0 = vld [vmem:[%s2589_s18 + $0xa70] sm:$0xff]  ;;  %v387_v1 = vld [vmem:[%s2589_s18 + $0x2b8] sm:$0xff] }
 0x1cb   : > { %v395_v2 = vld [vmem:[%s2589_s18 + $0x2f8] sm:$0xff]  ;;  %v2058_v6 = vpack.c.bf16 %v634_v0, %v626_v63 }
 0x1cc   : > { %v723_v63 = vld [vmem:[%s2589_s18 + $0xd38] sm:$0xff] }
 0x1cd   : > { %v731_v0 = vld [vmem:[%s2589_s18 + $0xd78] sm:$0xff] }
 0x1ce   : > { %1763 = vmatpush1.bf16.xpose.msra.mxu0 %v1762_v11  ;;  %v306_v11 = vld [vmem:[%s2589_s18 + $0x30] sm:$0xff] }
 0x1cf   : > { %1765 = vmatprep.subr.bf16.mxu0 %v1764_v13  ;;  %v562_v13 = vld [vmem:[%s2589_s18 + $0x830] sm:$0xff] }
 0x1d0   : > { %2019 = vmatpush1.bf16.xpose.msra.mxu1 %v2018_v12  ;;  %v314_v12 = vld [vmem:[%s2589_s18 + $0x70] sm:$0xff] }
 0x1d1   : > { %2021 = vmatprep.subr.bf16.mxu1 %v2020_v14  ;;  %v570_v14 = vld [vmem:[%s2589_s18 + $0x870] sm:$0xff]  ;;  %v1786_v20 = vpack.c.bf16 %v314_v12, %v306_v11 }
 0x1d2   : > { %v2042_v21 = vpack.c.bf16 %v570_v14, %v562_v13  ;;  %v642_v11 = vld [vmem:[%s2589_s18 + $0xab0] sm:$0xff]  ;;  %v403_v13 = vld [vmem:[%s2589_s18 + $0x338] sm:$0xff] }
 0x1d3   : > { %v650_v12 = vld [vmem:[%s2589_s18 + $0xaf0] sm:$0xff]  ;;  %v411_v14 = vld [vmem:[%s2589_s18 + $0x378] sm:$0xff] }
 0x1d6   : > { %1767 = vmatpush1.bf16.xpose.msra.mxu0 %v1766_v23  ;;  %v2044_v23 = vpack.c.bf16 %v587_v18, %v579_v17  ;;  %v2062_v18 = vpack.c.bf16 %v650_v12, %v642_v11  ;;  %v739_v11 = vld [vmem:[%s2589_s18 + $0xdb8] sm:$0xff] }
 0x1d7   : > { %1769 = vmatprep.subr.bf16.mxu0 %v1768_v25  ;;  %v322_v25 = vld [vmem:[%s2589_s18 + $0xb0] sm:$0xff]  ;;  %v747_v12 = vld [vmem:[%s2589_s18 + $0xdf8] sm:$0xff] }
 0x1d8   : > { %2023 = vmatpush1.bf16.xpose.msra.mxu1 %v2022_v24  ;;  %v299_v24 = vld [vmem:[#allocation3 + $0x38] sm:$0xff] }
 0x1d9   : > { %2025 = vmatprep.subr.bf16.mxu1 %v2024_v26  ;;  %v330_v26 = vld [vmem:[%s2589_s18 + $0xf0] sm:$0xff] }
 0x1da   : > { %v1790_v33 = vpack.c.bf16 %v330_v26, %v322_v25  ;;  %v419_v25 = vld [vmem:[%s2589_s18 + $0x3b8] sm:$0xff] }
 0x1db   : > { %v427_v26 = vld [vmem:[%s2589_s18 + $0x3f8] sm:$0xff] }
 0x1de   : > { %1771 = vmatpush1.bf16.xpose.msra.mxu0 %v1770_v35  ;;  %v1792_v35 = vpack.c.bf16 %v347_v30, %v339_v29 }
 0x1df   : > { %1773 = vmatprep.subr.bf16.mxu0 %v1772_v37  ;;  %v338_v37 = vld [vmem:[%s2589_s18 + $0x130] sm:$0xff] }
 0x1e0   : > { %2027 = vmatpush1.bf16.xpose.msra.mxu1 %v2026_v36  ;;  %v2048_v36 = vpack.c.bf16 %v603_v32, %v595_v31  ;;  %v1812_v31 = vpack.c.bf16 %v427_v26, %v419_v25  ;;  %v2068_v32 = vpack.c.bf16 %v683_v28, %v675_v27 }
 0x1e1   : > { %2029 = vmatprep.subr.bf16.mxu1 %v2028_v38  ;;  %v346_v38 = vld [vmem:[%s2589_s18 + $0x170] sm:$0xff] }
 0x1e2   : > { %v1794_v45 = vpack.c.bf16 %v346_v38, %v338_v37  ;;  %v435_v37 = vld [vmem:[%s2589_s18 + $0x438] sm:$0xff] }
 0x1e3   : > { %v443_v38 = vld [vmem:[%s2589_s18 + $0x478] sm:$0xff] }
 0x1e6   : > { %1775 = vmatpush1.bf16.xpose.msra.mxu0 %v1774_v47  ;;  %v1796_v47 = vpack.c.bf16 %v363_v42, %v355_v41 }
 0x1e7   : > { %1777 = vmatprep.subr.bf16.mxu0 %v1776_v49  ;;  %v354_v49 = vld [vmem:[%s2589_s18 + $0x1b0] sm:$0xff] }
 0x1e8   : > { %2031 = vmatpush1.bf16.xpose.msra.mxu1 %v2030_v48  ;;  %v2052_v48 = vpack.c.bf16 %v619_v44, %v611_v43  ;;  %v1816_v43 = vpack.c.bf16 %v443_v38, %v435_v37  ;;  %v2072_v44 = vpack.c.bf16 %v699_v40, %v691_v39 }
 0x1e9   : > { %2033 = vmatprep.subr.bf16.mxu1 %v2032_v50  ;;  %v362_v50 = vld [vmem:[%s2589_s18 + $0x1f0] sm:$0xff] }
 0x1ea   : > { %v1798_v57 = vpack.c.bf16 %v362_v50, %v354_v49  ;;  %v451_v49 = vld [vmem:[%s2589_s18 + $0x4b8] sm:$0xff] }
 0x1eb   : > { %v459_v50 = vld [vmem:[%s2589_s18 + $0x4f8] sm:$0xff] }
 0x1ee   : > { %1779 = vmatpush1.bf16.xpose.msra.mxu0 %v1778_v59  ;;  %v1800_v59 = vpack.c.bf16 %v379_v54, %v371_v53 }
 0x1ef   : > { %1781 = vmatprep.subr.bf16.mxu0 %v1780_v61  ;;  %v370_v61 = vld [vmem:[%s2589_s18 + $0x230] sm:$0xff] }
 0x1f0   : > { %2035 = vmatpush1.bf16.xpose.msra.mxu1 %v2034_v60  ;;  %v2056_v60 = vpack.c.bf16 %v635_v56, %v627_v55  ;;  %v1820_v55 = vpack.c.bf16 %v459_v50, %v451_v49  ;;  %v2076_v56 = vpack.c.bf16 %v715_v52, %v707_v51 }
 0x1f1   : > { %2037 = vmatprep.subr.bf16.mxu1 %v2036_v62  ;;  %v378_v62 = vld [vmem:[%s2589_s18 + $0x270] sm:$0xff] }
 0x1f2   : > { %v1802_v5 = vpack.c.bf16 %v378_v62, %v370_v61  ;;  %v467_v61 = vld [vmem:[%s2589_s18 + $0x538] sm:$0xff] }
 0x1f3   : > { %v475_v62 = vld [vmem:[%s2589_s18 + $0x578] sm:$0xff] }
 0x1f6   : > { %1783 = vmatpush1.bf16.xpose.msra.mxu0 %v1782_v7  ;;  %v1804_v7 = vpack.c.bf16 %v395_v2, %v387_v1 }
 0x1f7   : > { %1785 = vmatprep.subr.bf16.mxu0 %v1784_v9  ;;  %v386_v9 = vld [vmem:[%s2589_s18 + $0x2b0] sm:$0xff] }
 0x1f8   : > { %2039 = vmatpush1.bf16.xpose.msra.mxu1 %v2038_v8  ;;  %v2060_v8 = vpack.c.bf16 %v651_v4, %v643_v3  ;;  %v1824_v3 = vpack.c.bf16 %v475_v62, %v467_v61  ;;  %v2080_v4 = vpack.c.bf16 %v731_v0, %v723_v63 }
 0x1f9   : > { %2041 = vmatprep.subr.bf16.mxu1 %v2040_v10  ;;  %v394_v10 = vld [vmem:[%s2589_s18 + $0x2f0] sm:$0xff] }
 0x1fa   : > { %v1806_v17 = vpack.c.bf16 %v394_v10, %v386_v9  ;;  %v483_v9 = vld [vmem:[%s2589_s18 + $0x5b8] sm:$0xff] }
 0x1fb   : > { %v491_v10 = vld [vmem:[%s2589_s18 + $0x5f8] sm:$0xff] }
 0x1fd   : > { %1019 = vmatmul.mubr.f32.vlgmr.msra.gmra.mrb[0].mxu0 %v296_v19 }
 0x1fe   : > { %1787 = vmatpush1.bf16.xpose.msra.mxu0 %v1786_v20  ;;  %1089 = vmatprep.mubr.f32.mxu0 %v299_v24  ;;  %v2064_v20 = vpack.c.bf16 %v667_v16, %v659_v15  ;;  %v1828_v15 = vpack.c.bf16 %v491_v10, %v483_v9  ;;  %v2084_v16 = vpack.c.bf16 %v747_v12, %v739_v11  ;;  %v1395_v11 = vld [vmem:[%s247_s6] sm:$0xf] }
 0x1ff   : > { %1303 = vmatmul.mubr.f32.vlgmr.msra.gmra.mrb[0].mxu1 %v296_v19  ;;  %1789 = vmatprep.subr.bf16.mxu0 %v1788_v22  ;;  %v1808_v19 = vpack.c.bf16 %v411_v14, %v403_v13  ;;  %v410_v22 = vld [vmem:[%s2589_s18 + $0x370] sm:$0xff] }
 0x200   : > { %2043 = vmatpush1.bf16.xpose.msra.mxu1 %v2042_v21  ;;  %1373 = vmatprep.mubr.f32.mxu1 %v299_v24  ;;  %v402_v21 = vld [vmem:[%s2589_s18 + $0x330] sm:$0xff] }
 0x201   : > { %2045 = vmatprep.subr.bf16.mxu1 %v2044_v23  ;;  %v658_v23 = vld [vmem:[%s2589_s18 + $0xb30] sm:$0xff]  ;;  %v1810_v29 = vpack.c.bf16 %v410_v22, %v402_v21  ;;  %v499_v21 = vld [vmem:[%s2589_s18 + $0x638] sm:$0xff] }
 0x202   : > { %v666_v24 = vld [vmem:[%s2589_s18 + $0xb70] sm:$0xff]  ;;  %v507_v22 = vld [vmem:[%s2589_s18 + $0x678] sm:$0xff] }
 0x203   : > { %v2066_v30 = vpack.c.bf16 %v666_v24, %v658_v23  ;;  %v755_v23 = vld [vmem:[%s2589_s18 + $0xe38] sm:$0xff]  ;;  %v1832_v27 = vpack.c.bf16 %v507_v22, %v499_v21 }
 0x204   : > { %v763_v24 = vld [vmem:[%s2589_s18 + $0xe78] sm:$0xff] }
 0x205   : > { %v2088_v28 = vpack.c.bf16 %v763_v24, %v755_v23 }
 0x206   : > { %1791 = vmatpush1.bf16.xpose.msra.mxu0 %v1790_v33  ;;  %v418_v33 = vld [vmem:[%s2589_s18 + $0x3b0] sm:$0xff] }
 0x207   : > { %1793 = vmatprep.subr.bf16.mxu0 %v1792_v35  ;;  %v674_v35 = vld [vmem:[%s2589_s18 + $0xbb0] sm:$0xff] }
 0x208   : > { %2047 = vmatpush1.bf16.xpose.msra.mxu1 %v2046_v34  ;;  %v426_v34 = vld [vmem:[%s2589_s18 + $0x3f0] sm:$0xff] }
 0x209   : > { %2049 = vmatprep.subr.bf16.mxu1 %v2048_v36  ;;  %v682_v36 = vld [vmem:[%s2589_s18 + $0xbf0] sm:$0xff]  ;;  %v1814_v41 = vpack.c.bf16 %v426_v34, %v418_v33  ;;  %v515_v33 = vld [vmem:[%s2589_s18 + $0x6b8] sm:$0xff] }
 0x20a   : > { %v2070_v42 = vpack.c.bf16 %v682_v36, %v674_v35  ;;  %v523_v34 = vld [vmem:[%s2589_s18 + $0x6f8] sm:$0xff] }
 0x20b   : > { %v771_v35 = vld [vmem:[%s2589_s18 + $0xeb8] sm:$0xff]  ;;  %v1836_v39 = vpack.c.bf16 %v523_v34, %v515_v33 }
 0x20c   : > { %v779_v36 = vld [vmem:[%s2589_s18 + $0xef8] sm:$0xff] }
 0x20d   : > { %v2092_v40 = vpack.c.bf16 %v779_v36, %v771_v35 }
 0x20e   : > { %1795 = vmatpush1.bf16.xpose.msra.mxu0 %v1794_v45  ;;  %v434_v45 = vld [vmem:[%s2589_s18 + $0x430] sm:$0xff] }
 0x20f   : > { %1797 = vmatprep.subr.bf16.mxu0 %v1796_v47  ;;  %v690_v47 = vld [vmem:[%s2589_s18 + $0xc30] sm:$0xff] }
 0x210   : > { %2051 = vmatpush1.bf16.xpose.msra.mxu1 %v2050_v46  ;;  %v442_v46 = vld [vmem:[%s2589_s18 + $0x470] sm:$0xff] }
 0x211   : > { %2053 = vmatprep.subr.bf16.mxu1 %v2052_v48  ;;  %v698_v48 = vld [vmem:[%s2589_s18 + $0xc70] sm:$0xff]  ;;  %v1818_v53 = vpack.c.bf16 %v442_v46, %v434_v45  ;;  %v531_v45 = vld [vmem:[%s2589_s18 + $0x738] sm:$0xff] }
 0x212   : > { %v2074_v54 = vpack.c.bf16 %v698_v48, %v690_v47  ;;  %v539_v46 = vld [vmem:[%s2589_s18 + $0x778] sm:$0xff] }
 0x213   : > { %v787_v47 = vld [vmem:[%s2589_s18 + $0xf38] sm:$0xff]  ;;  %v1840_v51 = vpack.c.bf16 %v539_v46, %v531_v45 }
 0x214   : > { %v795_v48 = vld [vmem:[%s2589_s18 + $0xf78] sm:$0xff] }
 0x215   : > { %v2096_v52 = vpack.c.bf16 %v795_v48, %v787_v47 }
 0x216   : > { %1799 = vmatpush1.bf16.xpose.msra.mxu0 %v1798_v57  ;;  %v450_v57 = vld [vmem:[%s2589_s18 + $0x4b0] sm:$0xff] }
 0x217   : > { %1801 = vmatprep.subr.bf16.mxu0 %v1800_v59  ;;  %v706_v59 = vld [vmem:[%s2589_s18 + $0xcb0] sm:$0xff] }
 0x218   : > { %2055 = vmatpush1.bf16.xpose.msra.mxu1 %v2054_v58  ;;  %v458_v58 = vld [vmem:[%s2589_s18 + $0x4f0] sm:$0xff] }
 0x219   : > { %2057 = vmatprep.subr.bf16.mxu1 %v2056_v60  ;;  %v714_v60 = vld [vmem:[%s2589_s18 + $0xcf0] sm:$0xff]  ;;  %v1822_v1 = vpack.c.bf16 %v458_v58, %v450_v57  ;;  %v547_v57 = vld [vmem:[%s2589_s18 + $0x7b8] sm:$0xff] }
 0x21a   : > { %v2078_v2 = vpack.c.bf16 %v714_v60, %v706_v59  ;;  %v555_v58 = vld [vmem:[%s2589_s18 + $0x7f8] sm:$0xff] }
 0x21b   : > { %v803_v59 = vld [vmem:[%s2589_s18 + $0xfb8] sm:$0xff]  ;;  %v1844_v63 = vpack.c.bf16 %v555_v58, %v547_v57 }
 0x21c   : > { %v811_v60 = vld [vmem:[%s2589_s18 + $0xff8] sm:$0xff] }
 0x21d   : > { %v2100_v0 = vpack.c.bf16 %v811_v60, %v803_v59 }
 0x21e   : > { %1803 = vmatpush1.bf16.xpose.msra.mxu0 %v1802_v5  ;;  %v466_v5 = vld [vmem:[%s2589_s18 + $0x530] sm:$0xff] }
 0x21f   : > { %1805 = vmatprep.subr.bf16.mxu0 %v1804_v7  ;;  %v722_v7 = vld [vmem:[%s2589_s18 + $0xd30] sm:$0xff] }
 0x220   : > { %2059 = vmatpush1.bf16.xpose.msra.mxu1 %v2058_v6  ;;  %v474_v6 = vld [vmem:[%s2589_s18 + $0x570] sm:$0xff] }
 0x221   : > { %2061 = vmatprep.subr.bf16.mxu1 %v2060_v8  ;;  %v730_v8 = vld [vmem:[%s2589_s18 + $0xd70] sm:$0xff]  ;;  %v1826_v13 = vpack.c.bf16 %v474_v6, %v466_v5 }
 0x222   : > { %v2082_v14 = vpack.c.bf16 %v730_v8, %v722_v7  ;;  %v298_v7 = vld [vmem:[#allocation3 + $0x30] sm:$0xff]  ;;  %v1397_v8 = vlaneseq }
 0x224   : > { %v1398_v9 = vshrl.u32 %v1397_v8, 7 }
 0x226   : > { %1807 = vmatpush1.bf16.xpose.msra.mxu0 %v1806_v17  ;;  %v482_v17 = vld [vmem:[%s2589_s18 + $0x5b0] sm:$0xff]  ;;  %v1399_v10 = vsub.s32 0, %v1398_v9  ;;  %v1407_v12 = vsub.s32 2, %v1398_v9 }
 0x227   : > { %1809 = vmatprep.subr.bf16.mxu0 %v1808_v19  ;;  %v738_v19 = vld [vmem:[%s2589_s18 + $0xdb0] sm:$0xff] }
 0x228   : > { %2063 = vmatpush1.bf16.xpose.msra.mxu1 %v2062_v18  ;;  %v490_v18 = vld [vmem:[%s2589_s18 + $0x5f0] sm:$0xff] }
 0x229   : > { %2065 = vmatprep.subr.bf16.mxu1 %v2064_v20  ;;  %v746_v20 = vld [vmem:[%s2589_s18 + $0xdf0] sm:$0xff]  ;;  %v1830_v25 = vpack.c.bf16 %v490_v18, %v482_v17 }
 0x22a   : > { %v2086_v26 = vpack.c.bf16 %v746_v20, %v738_v19 }
 0x22e   : > { %1811 = vmatpush1.bf16.xpose.msra.mxu0 %v1810_v29  ;;  %v498_v29 = vld [vmem:[%s2589_s18 + $0x630] sm:$0xff] }
 0x22f   : > { %1813 = vmatprep.subr.bf16.mxu0 %v1812_v31  ;;  %v754_v31 = vld [vmem:[%s2589_s18 + $0xe30] sm:$0xff] }
 0x230   : > { %2067 = vmatpush1.bf16.xpose.msra.mxu1 %v2066_v30  ;;  %v506_v30 = vld [vmem:[%s2589_s18 + $0x670] sm:$0xff] }
 0x231   : > { %2069 = vmatprep.subr.bf16.mxu1 %v2068_v32  ;;  %v762_v32 = vld [vmem:[%s2589_s18 + $0xe70] sm:$0xff]  ;;  %v1834_v37 = vpack.c.bf16 %v506_v30, %v498_v29 }
 0x232   : > { %v2090_v38 = vpack.c.bf16 %v762_v32, %v754_v31 }
 0x236   : > { %1815 = vmatpush1.bf16.xpose.msra.mxu0 %v1814_v41  ;;  %v514_v41 = vld [vmem:[%s2589_s18 + $0x6b0] sm:$0xff] }
 0x237   : > { %1817 = vmatprep.subr.bf16.mxu0 %v1816_v43  ;;  %v770_v43 = vld [vmem:[%s2589_s18 + $0xeb0] sm:$0xff] }
 0x238   : > { %2071 = vmatpush1.bf16.xpose.msra.mxu1 %v2070_v42  ;;  %v522_v42 = vld [vmem:[%s2589_s18 + $0x6f0] sm:$0xff] }
 0x239   : > { %2073 = vmatprep.subr.bf16.mxu1 %v2072_v44  ;;  %v778_v44 = vld [vmem:[%s2589_s18 + $0xef0] sm:$0xff]  ;;  %v1838_v49 = vpack.c.bf16 %v522_v42, %v514_v41 }
 0x23a   : > { %v2094_v50 = vpack.c.bf16 %v778_v44, %v770_v43 }
 0x23e   : > { %1819 = vmatpush1.bf16.xpose.msra.mxu0 %v1818_v53  ;;  %v530_v53 = vld [vmem:[%s2589_s18 + $0x730] sm:$0xff] }
 0x23f   : > { %1821 = vmatprep.subr.bf16.mxu0 %v1820_v55  ;;  %v786_v55 = vld [vmem:[%s2589_s18 + $0xf30] sm:$0xff] }
 0x240   : > { %2075 = vmatpush1.bf16.xpose.msra.mxu1 %v2074_v54  ;;  %v538_v54 = vld [vmem:[%s2589_s18 + $0x770] sm:$0xff] }
 0x241   : > { %2077 = vmatprep.subr.bf16.mxu1 %v2076_v56  ;;  %v794_v56 = vld [vmem:[%s2589_s18 + $0xf70] sm:$0xff]  ;;  %v1842_v61 = vpack.c.bf16 %v538_v54, %v530_v53 }
 0x242   : > { %v2098_v62 = vpack.c.bf16 %v794_v56, %v786_v55 }
 0x246   : > { %1823 = vmatpush1.bf16.xpose.msra.mxu0 %v1822_v1  ;;  %v546_v1 = vld [vmem:[%s2589_s18 + $0x7b0] sm:$0xff] }
 0x247   : > { %1825 = vmatprep.subr.bf16.mxu0 %v1824_v3  ;;  %v802_v3 = vld [vmem:[%s2589_s18 + $0xfb0] sm:$0xff] }
 0x248   : > { %2079 = vmatpush1.bf16.xpose.msra.mxu1 %v2078_v2  ;;  %v554_v2 = vld [vmem:[%s2589_s18 + $0x7f0] sm:$0xff] }
 0x249   : > { %2081 = vmatprep.subr.bf16.mxu1 %v2080_v4  ;;  %v810_v4 = vld [vmem:[%s2589_s18 + $0xff0] sm:$0xff]  ;;  %v1846_v5 = vpack.c.bf16 %v554_v2, %v546_v1 }
 0x24a   : > { %v2102_v6 = vpack.c.bf16 %v810_v4, %v802_v3 }
 0x24e   : > { %1827 = vmatpush1.bf16.xpose.msra.mxu0 %v1826_v13  ;;  %v1403_v13 = vsub.s32 1, %v1398_v9 }
 0x24f   : > { %1829 = vmatprep.subr.bf16.mxu0 %v1828_v15  ;;  %v1400_v15 = vrot.slane %v1395_v11, %v1399_v10 }
 0x250   : > { %2083 = vmatpush1.bf16.xpose.msra.mxu1 %v2082_v14  ;;  %v1411_v14 = vsub.s32 3, %v1398_v9  ;;  %v1404_v17 = vrot.slane %v1395_v11, %v1403_v13 }
 0x251   : > { %2085 = vmatprep.subr.bf16.mxu1 %v2084_v16  ;;  %v1408_v16 = vrot.slane %v1395_v11, %v1407_v12 }
 0x252   : > { %v1412_v18 = vrot.slane %v1395_v11, %v1411_v14 }
 0x256   : > { %1831 = vmatpush1.bf16.xpose.msra.mxu0 %v1830_v25 }
 0x257   : > { %1833 = vmatprep.subr.bf16.mxu0 %v1832_v27 }
 0x258   : > { %2087 = vmatpush1.bf16.xpose.msra.mxu1 %v2086_v26 }
 0x259   : > { %2089 = vmatprep.subr.bf16.mxu1 %v2088_v28 }
 0x25e   : > { %1835 = vmatpush1.bf16.xpose.msra.mxu0 %v1834_v37 }
 0x25f   : > { %1837 = vmatprep.subr.bf16.mxu0 %v1836_v39 }
 0x260   : > { %2091 = vmatpush1.bf16.xpose.msra.mxu1 %v2090_v38 }
 0x261   : > { %2093 = vmatprep.subr.bf16.mxu1 %v2092_v40 }
 0x266   : > { %1839 = vmatpush1.bf16.xpose.msra.mxu0 %v1838_v49 }
 0x267   : > { %1841 = vmatprep.subr.bf16.mxu0 %v1840_v51 }
 0x268   : > { %2095 = vmatpush1.bf16.xpose.msra.mxu1 %v2094_v50 }
 0x269   : > { %2097 = vmatprep.subr.bf16.mxu1 %v2096_v52 }
 0x26e   : > { %1843 = vmatpush1.bf16.xpose.msra.mxu0 %v1842_v61 }
 0x26f   : > { %1845 = vmatprep.subr.bf16.mxu0 %v1844_v63 }
 0x270   : > { %2099 = vmatpush1.bf16.xpose.msra.mxu1 %v2098_v62 }
 0x271   : > { %2101 = vmatprep.subr.bf16.mxu1 %v2100_v0 }
 0x276   : > { %1847 = vmatpush1.bf16.xpose.msra.mxu0 %v1846_v5 }
 0x278   : > { %2103 = vmatpush1.bf16.xpose.msra.mxu1 %v2102_v6 }
 0x27d   : > { %1090 = vmatmul.mubr.f32.vlgmr.msra.gmra.mrb[0].mxu0 %v298_v7 }
 0x27f   : > { %1374 = vmatmul.mubr.f32.vlgmr.msra.gmra.mrb[0].mxu1 %v298_v7 }
 0x350   : > { %v1091_v19 = vpop.f32.mrb[0].mxu0 }
 0x351   : > { %v1417_v20 = vadd.f32 %v1400_v15, %v1091_v19  ;;  %v1093_v22 = vpop.f32.mrb[1].mxu0 }
 0x352   : > { %v1375_v21 = vpop.f32.mrb[0].mxu1  ;;  %v1418_v24 = vadd.f32 %v1404_v17, %v1093_v22 }
 0x353   : > { %v1419_v23 = vadd.f32 %v1408_v16, %v1375_v21  ;;  %v1377_v25 = vpop.f32.mrb[1].mxu1  ;;  %1421 = vst [vmem:[%s274_s20] sm:$0xff] %v1417_v20 }
 0x354   : > { %v1420_v26 = vadd.f32 %v1412_v18, %v1377_v25  ;;  %1422 = vst [vmem:[%s274_s20 + $0x8] sm:$0xff] %v1418_v24 }
 0x355   : > { %1423 = vst [vmem:[%s274_s20 + $0x10] sm:$0xff] %v1419_v23 }
 0x356   : > { %1424 = vst [vmem:[%s274_s20 + $0x18] sm:$0xff] %v1420_v26 }
 0x357   : > { %2297 = shalt.err (!%p2294_p2)
}
 0x358   : > { %s2298_s11 = scalar_lea.hbm %s3113_s21, 512  ;;  %s2302_s29 = scalar_lea.hbm %s3165_s3, 1024 }
 0x359   : > { %p2299_p7 = scmp.ne.s32.totalorder %s3113_s21, %s2298_s11  ;;  %p2303_p8 = scmp.lt.u32.totalorder %s3113_s21, %s3165_s3 }
 0x35a   : > { %p2304_p10 = scmp.lt.u32.totalorder %s2302_s29, %s2298_s11  ;;  %p2306_p13 = scmp.lt.u32.totalorder %s2298_s11, %s3113_s21 }
 0x35b   : > { %p2300_p6 = pnand %p2299_p7, %p3190_p5 }
 0x35c   : > { %p2305_p11 = por %p2304_p10, %p2303_p8 }
 0x35d   : > { %p2301_p4 = pneg %p2300_p6 }
 0x35e   : > { %p2307_p1 = por %p2306_p13, %p2305_p11 }
 0x360   : > { %p2308_p12 = pnand %p2307_p1, %p2301_p4 }
 0x362   : > { %2311 = shalt.err (!%p2308_p12)
}
 0x363   : > { %2124 = dma.vmem_to_hbm [thread:$0]  (%p3190_p5), %s3115_s26, 512, %s3113_s21, %s1426_s15  }
 0x364 PF: > { %s1454_s5 = sand.u32 1, %s2350_s12   ;;  %p3191_p0 = scmp.ne.s32.totalorder %s3180_s4, 0 }
 0x365   : > { %p3192_p3 = scmp.ge.s32.totalorder %s2370_s17, 2  ;;  %s1455_s27 = scalar_lea.sflag [#allocation5], %s1454_s5 }
 0x367   : > { %p2138_p9 = pnand %p3192_p3, %p3191_p0 }
 0x369   : > { %2345 = dma.done.wait (!%p2138_p9), %s1455_s27, 512  }
 0x36a   : > { %2347 = vsyncadd (!%p2138_p9), %s1455_s27, 4294966784  ;;  %s20_s17 = sadd.s32 1, %s2370_s17   ;;  %s3193_s28 = sld [smem:[#allocation13_spill]] }
 0x36b   : > { %p17_p2 = scmp.ge.s32.totalorder %s20_s17, 4   ;;  %s3194_s12 = smov %s2354_s13 }
 0x36c   : > { %s3195_s13 = smov %s2358_s14  ;;  %s3196_s14 = smov %s2446_s24 }
 0x36d   : > { %s3197_s15 = smov %s2366_s16  ;;  %19 = sbr.rel (!%p17_p2) target bundleno = 9 (0x9), region = 102 }
 0x370   : > { %s3198_s16 = smov %s3193_s28 }
 0x374   :  { %1460 = vsyncpa [#allocation4], 1 }
 0x375   :  { %1462 = vsyncpa [#allocation4 + $0x1], 1 }
 0x376   :  { %1463 = vsyncpa [#allocation7], 1 }
 0x377   :  { %1465 = vsyncpa [#allocation7 + $0x1], 1 }
 0x378   :  { %1466 = vsyncpa [#allocation5], 1 }
 0x379   :  { %1468 = vsyncpa [#allocation5 + $0x1], 1 }

</bundles_post_ra>
